<compile_context>
chip_gen: v7x
topology: tpu7x:2x2x1
jax: 0.10.0
libtpu: 0.0.40
codegen_flags: <defaults>
</compile_context>

<pallas_src>
import math

import jax
import jax.numpy as jnp
from jax.experimental import pallas as pl
from jax.experimental.pallas import tpu as pltpu

# Set to jnp.bfloat16 to use the native high-rate MXU path on v6e/v7x (and
# halve weight/activation VMEM + DMA bytes).  Default f32 keeps numerics
# identical to the f32 PyTorch reference; accumulation is always f32.
MXU_DTYPE = jnp.float32


# ----------------------------------------------------------------------------
# Pallas kernels
# ----------------------------------------------------------------------------
def bilstm_chunk_kernel(gx_ref, whh_ref, o_ref, h_sc, c_sc):
    """One (direction, time-chunk) grid step of a bidirectional LSTM layer.

    gx_ref : (Tc, B, 4H)  precomputed x @ W_ih + b for this direction/chunk.
    whh_ref: (H, 4H)      recurrent weights for this direction.
    o_ref  : (Tc, B, H)   hidden-state outputs for this direction/chunk.
    h_sc/c_sc: (B, H)     recurrent state; persists across time chunks.
    """
    d = pl.program_id(0)                      # 0 = forward, 1 = backward

    @pl.when(pl.program_id(1) == 0)           # first chunk of this direction
    def _():
        h_sc[...] = jnp.zeros_like(h_sc)
        c_sc[...] = jnp.zeros_like(c_sc)

    Tc, B, _ = gx_ref.shape
    H = h_sc.shape[1]

    # Loop-invariant values hoisted out of the unrolled recurrence.
    whh = whh_ref[...].astype(MXU_DTYPE)                      # (H, 4H)
    lane = jax.lax.broadcasted_iota(jnp.int32, (B, 4 * H), 1)
    g_mask = (lane >= 2 * H) & (lane < 3 * H)                 # cell gate lanes

    def step(t, carry):
        # Local time index: t for forward, Tc-1-t for backward.
        lt = t + d * (Tc - 1 - 2 * t)
        gates = gx_ref[lt] + jnp.dot(
            h_sc[...].astype(MXU_DTYPE), whh,
            preferred_element_type=jnp.float32)               # (B, 4H)
        # Full-width activations (2 EUP passes) + one lane-mask select instead
        # of four separate 32-lane sub-slice activations.
        act = jnp.where(g_mask, jnp.tanh(gates), jax.nn.sigmoid(gates))
        i_g = act[:, 0 * H:1 * H]
        f_g = act[:, 1 * H:2 * H]
        g_g = act[:, 2 * H:3 * H]
        o_g = act[:, 3 * H:4 * H]
        c_new = f_g * c_sc[...] + i_g * g_g
        h_new = o_g * jnp.tanh(c_new)
        c_sc[...] = c_new
        h_sc[...] = h_new
        o_ref[lt] = h_new.astype(o_ref.dtype)   # VMEM store; one HBM DMA/chunk
        return carry

    jax.lax.fori_loop(0, Tc, step, 0, unroll=True if Tc <= 32 else 8)


def head_kernel(x_ref, w1_ref, b1_ref, w2_ref, b2_ref, o_ref):
    """LeakyReLU -> Linear -> LeakyReLU -> Linear -> Sigmoid (dropout = eval)."""
    x = x_ref[...]
    x = jnp.where(x > 0, x, 0.01 * x)                         # LeakyReLU(0.01)
    h = jnp.dot(x.astype(MXU_DTYPE), w1_ref[...].astype(MXU_DTYPE),
                preferred_element_type=jnp.float32) + b1_ref[...]
    h = jnp.where(h > 0, h, 0.01 * h)                         # LeakyReLU(0.01)
    # TODO(synk): nn.Dropout(p) is identity in eval mode; not applied here.
    y = jnp.dot(h.astype(MXU_DTYPE), w2_ref[...].astype(MXU_DTYPE),
                preferred_element_type=jnp.float32) + b2_ref[...]
    o_ref[...] = jax.nn.sigmoid(y).astype(o_ref.dtype)


# ----------------------------------------------------------------------------
# Wrappers around pallas_call
# ----------------------------------------------------------------------------
def _pick_time_chunk(T):
    if T <= 128:
        return T
    for cand in (128, 64, 32, 16, 8, 4, 2):
        if T % cand == 0:
            return cand
    return 1


def bilstm_layer(x_tm, wih_s, whh_s, b_s):
    """One bidirectional LSTM layer (h_0 = c_0 = 0).

    x_tm : (T, B, Din) time-major input.
    wih_s: (2, Din, 4H), whh_s: (2, H, 4H), b_s: (2, 4H)
           (dir 0 = fwd, 1 = bwd; gate order i, f, g, o; b = b_ih + b_hh).
    Returns (T, B, 2H): forward states in [..., :H], backward in [..., H:].
    """
    T, B, _ = x_tm.shape
    H = whh_s.shape[1]
    Tc = _pick_time_chunk(T)
    nc = T // Tc

    # Hoisted input projection: one large MXU-friendly GEMM over all timesteps
    # and both directions instead of a tiny matmul inside the serial T-loop.
    gx = jnp.einsum("tbd,kdg->ktbg", x_tm, wih_s) + b_s[:, None, None, :]

    # Backward direction (d = 1) visits chunks in reverse order so recurrent
    # state flows from t = T-1 down to t = 0; within a chunk the kernel also
    # iterates in reverse for d = 1.
    def chunk_map(d, i):
        return (d, i + d * (nc - 1 - 2 * i), 0, 0)

    out = pl.pallas_call(
        bilstm_chunk_kernel,
        out_shape=jax.ShapeDtypeStruct((2, T, B, H), jnp.float32),
        grid_spec=pltpu.PrefetchScalarGridSpec(
            num_scalar_prefetch=0,
            grid=(2, nc),                        # (direction, time chunk)
            in_specs=[
                pl.BlockSpec((None, Tc, B, 4 * H), chunk_map),
                # TODO(synk): if H scales (large W_hh), request single
                # buffering for this constant-index weight block and raise
                # vmem_limit_bytes (v7x has 64 MiB VMEM).
                pl.BlockSpec((None, H, 4 * H), lambda d, i: (d, 0, 0)),
            ],
            out_specs=pl.BlockSpec((None, Tc, B, H), chunk_map),
            scratch_shapes=[
                pltpu.VMEM((B, H), jnp.float32),   # h state
                pltpu.VMEM((B, H), jnp.float32),   # c state
            ],
        ),
        # Direction axis is independent -> parallel (v7x: one TC per
        # direction); the time-chunk axis carries state -> arbitrary.
        compiler_params=pltpu.CompilerParams(
            dimension_semantics=("parallel", "arbitrary")),
    )(gx, whh_s)

    # (2, T, B, H) -> (T, B, 2H)
    return jnp.concatenate([out[0], out[1]], axis=-1)


def mlp_head(x2d, w1, b1, w2, b2):
    """Row-tiled MLP head over N = B*T rows."""
    N, F = x2d.shape
    H2 = w1.shape[1]
    C = w2.shape[1]
    TN = N
    for cand in (512, 256, 128):
        if N > cand and N % cand == 0:
            TN = cand
            break
    return pl.pallas_call(
        head_kernel,
        out_shape=jax.ShapeDtypeStruct((N, C), jnp.float32),
        grid_spec=pltpu.PrefetchScalarGridSpec(
            num_scalar_prefetch=0,
            grid=(N // TN,),
            in_specs=[
                pl.BlockSpec((TN, F), lambda i: (i, 0)),
                pl.BlockSpec((F, H2), lambda i: (0, 0)),
                pl.BlockSpec((1, H2), lambda i: (0, 0)),
                pl.BlockSpec((H2, C), lambda i: (0, 0)),
                pl.BlockSpec((1, C), lambda i: (0, 0)),
            ],
            out_specs=pl.BlockSpec((TN, C), lambda i: (i, 0)),
        ),
        compiler_params=pltpu.CompilerParams(
            dimension_semantics=("parallel",)),
    )(x2d, w1, b1, w2, b2)


# ----------------------------------------------------------------------------
# Parameter initialization (deterministic, PyTorch-like uniform init)
# ----------------------------------------------------------------------------
def init_params(key, num_classes, input_size, hidden_size, hidden2_size,
                num_stacked_layers):
    def uni(k, shape, bound):
        return jax.random.uniform(k, shape, jnp.float32, -bound, bound)

    keys = jax.random.split(key, num_stacked_layers * 2 * 4 + 4)
    ki = 0
    k_lstm = 1.0 / math.sqrt(hidden_size)
    layers = []
    for layer in range(num_stacked_layers):
        in_l = input_size if layer == 0 else 2 * hidden_size
        wih, whh, b = [], [], []
        for _direction in range(2):
            wih.append(uni(keys[ki], (in_l, 4 * hidden_size), k_lstm)); ki += 1
            whh.append(uni(keys[ki], (hidden_size, 4 * hidden_size), k_lstm)); ki += 1
            bih = uni(keys[ki], (4 * hidden_size,), k_lstm); ki += 1
            bhh = uni(keys[ki], (4 * hidden_size,), k_lstm); ki += 1
            b.append(bih + bhh)
        layers.append({"wih": jnp.stack(wih),      # (2, Din, 4H)
                       "whh": jnp.stack(whh),      # (2, H, 4H)
                       "b": jnp.stack(b)})         # (2, 4H)
    params = {"lstm": layers}

    k1 = 1.0 / math.sqrt(2 * hidden_size)
    params["w1"] = uni(keys[ki], (2 * hidden_size, hidden2_size), k1); ki += 1
    params["b1"] = uni(keys[ki], (1, hidden2_size), k1); ki += 1
    k2 = 1.0 / math.sqrt(hidden2_size)
    params["w2"] = uni(keys[ki], (hidden2_size, num_classes), k2); ki += 1
    params["b2"] = uni(keys[ki], (1, num_classes), k2); ki += 1
    return params


# ----------------------------------------------------------------------------
# Forward pass (mirrors competativeLSTM.forward, eval mode)
# ----------------------------------------------------------------------------
def _model_apply(params, sentence):
    sentence = sentence.astype(jnp.float32)
    B, T, _ = sentence.shape

    x_tm = jnp.transpose(sentence, (1, 0, 2))          # (T, B, Din), time-major
    for lp in params["lstm"]:
        x_tm = bilstm_layer(x_tm, lp["wih"], lp["whh"], lp["b"])
        # TODO(synk): inter-layer nn.LSTM dropout is identity in eval mode.
    output = jnp.transpose(x_tm, (1, 0, 2))            # (B, T, 2H)

    flat = output.reshape(B * T, output.shape[-1])
    out_flat = mlp_head(flat, params["w1"], params["b1"],
                        params["w2"], params["b2"])
    return out_flat.reshape(B, T, -1)


model_apply = jax.jit(_model_apply)


@jax.jit
def weighted_cross_entropy(logits, labels, class_weights):
    """nn.CrossEntropyLoss(weight=..., ignore_index=-1) on 2-D logits."""
    valid = labels != -1
    safe_labels = jnp.where(valid, labels, 0)
    logp = jax.nn.log_softmax(logits, axis=-1)
    nll = -jnp.take_along_axis(logp, safe_labels[:, None], axis=-1)[:, 0]
    w = class_weights[safe_labels] * valid.astype(jnp.float32)
    return jnp.sum(nll * w) / jnp.sum(w)


def forward(params, sentence, labels=None, tags_weights=(1.0, 10.0)):
    out = model_apply(params, sentence)
    if labels is None:
        return out, None
    # PyTorch: `if torch.tensor(2) in labels: return (out, None)`.  The check
    # is data-dependent, so it stays outside jit (concrete eager bool); all
    # heavy compute above / below is jitted.
    if bool(jnp.any(labels == 2)):
        return out, None
    loss = weighted_cross_entropy(
        out.reshape(-1, out.shape[-1]),
        labels.reshape(-1),
        jnp.asarray(tags_weights, jnp.float32))
    return out, loss


# ----------------------------------------------------------------------------
if __name__ == "__main__":
    num_classes = 2
    input_size = 16
    hidden_size = 32
    hidden2_size = 32
    num_stacked_layers = 2
    B, T = 2, 8

    key = jax.random.PRNGKey(0)
    pkey, xkey, lkey = jax.random.split(key, 3)
    params = init_params(pkey, num_classes, input_size, hidden_size,
                         hidden2_size, num_stacked_layers)

    x = jax.random.normal(xkey, (B, T, input_size), jnp.float32)
    labels = jax.random.randint(lkey, (B, T), -1, num_classes)  # no "2" tags

    out, loss = forward(params, x, labels)
    out = jax.block_until_ready(out)
    if loss is not None:
        loss = jax.block_until_ready(loss)

    assert out.shape == (B, T, num_classes)
    assert bool(jnp.all(jnp.isfinite(out)))
    if loss is not None:
        assert bool(jnp.isfinite(loss))
    print("KERNEL_OK")
</pallas_src>

<mosaic_0001>
module attributes {stable_mosaic.version = 11 : i64} {
  func.func @bilstm_chunk_kernel(%arg0: i32, %arg1: i32, %arg2: memref<1x8x2x128xf32, #tpu.memory_space<vmem>>, %arg3: memref<1x32x128xf32, #tpu.memory_space<vmem>>, %arg4: memref<1x8x2x32xf32, #tpu.memory_space<vmem>>, %arg5: memref<2x32xf32, #tpu.memory_space<vmem>>, %arg6: memref<2x32xf32, #tpu.memory_space<vmem>>) attributes {dimension_semantics = [#tpu.dimension_semantics<parallel>, #tpu.dimension_semantics<arbitrary>], iteration_bounds = array<i64: 2, 1>, scalar_prefetch = 0 : i64, scratch_operands = 2 : i64, tpu.core_type = #tpu.core_type<tc>, window_params = [{transform_indices = @transform_0, window_bounds = array<i64: 1, 8, 2, 128>}, {transform_indices = @transform_1, window_bounds = array<i64: 1, 32, 128>}, {transform_indices = @transform_2, window_bounds = array<i64: 1, 8, 2, 32>}]} {
    %c0_i32 = arith.constant 0 : i32
    %0 = arith.cmpi eq, %arg1, %c0_i32 : i32
    %1 = arith.extui %0 : i1 to i32
    %c0_i32_0 = arith.constant 0 : i32
    %2 = arith.cmpi ne, %1, %c0_i32_0 : i32
    scf.if %2 {
      %cst_147 = arith.constant 0.000000e+00 : f32
      %275 = vector.broadcast %cst_147 : f32 to vector<2x32xf32>
      %c0_148 = arith.constant 0 : index
      %c0_149 = arith.constant 0 : index
      %276 = vector.load %arg5[%c0_148, %c0_149] : memref<2x32xf32, #tpu.memory_space<vmem>>, vector<2x32xf32>
      tpu.vector_store %arg5[%c0_148, %c0_149], %275 {strides = array<i32>} : memref<2x32xf32, #tpu.memory_space<vmem>>, vector<2x32xf32>,
      %cst_150 = arith.constant 0.000000e+00 : f32
      %277 = vector.broadcast %cst_150 : f32 to vector<2x32xf32>
      %c0_151 = arith.constant 0 : index
      %c0_152 = arith.constant 0 : index
      %278 = vector.load %arg6[%c0_151, %c0_152] : memref<2x32xf32, #tpu.memory_space<vmem>>, vector<2x32xf32>
      tpu.vector_store %arg6[%c0_151, %c0_152], %277 {strides = array<i32>} : memref<2x32xf32, #tpu.memory_space<vmem>>, vector<2x32xf32>,
    } else {
    }
    %c0 = arith.constant 0 : index
    %c0_1 = arith.constant 0 : index
    %c0_2 = arith.constant 0 : index
    %3 = vector.load %arg3[%c0, %c0_1, %c0_2] : memref<1x32x128xf32, #tpu.memory_space<vmem>>, vector<1x32x128xf32>
    %4 = vector.shape_cast %3 : vector<1x32x128xf32> to vector<32x128xf32>
    %5 = tpu.iota {dimensions = array<i32: 1>} : vector<2x128xi32>
    %c64_i32 = arith.constant 64 : i32
    %6 = vector.broadcast %c64_i32 : i32 to vector<2x128xi32>
    %7 = arith.cmpi sge, %5, %6 : vector<2x128xi32>
    %c96_i32 = arith.constant 96 : i32
    %8 = vector.broadcast %c96_i32 : i32 to vector<2x128xi32>
    %9 = arith.cmpi slt, %5, %8 : vector<2x128xi32>
    %10 = arith.andi %7, %9 : vector<2x128xi1>
    %c0_i32_3 = arith.constant 0 : i32
    %c2_i32 = arith.constant 2 : i32
    %11 = arith.muli %c2_i32, %c0_i32_3 : i32
    %c7_i32 = arith.constant 7 : i32
    %12 = arith.subi %c7_i32, %11 : i32
    %13 = arith.muli %arg0, %12 : i32
    %14 = arith.addi %c0_i32_3, %13 : i32
    %c0_4 = arith.constant 0 : index
    %15 = arith.index_cast %14 : i32 to index
    %c0_5 = arith.constant 0 : index
    %c0_6 = arith.constant 0 : index
    %16 = vector.load %arg2[%c0_4, %15, %c0_5, %c0_6] : memref<1x8x2x128xf32, #tpu.memory_space<vmem>>, vector<1x1x2x128xf32>
    %17 = vector.shape_cast %16 : vector<1x1x2x128xf32> to vector<2x128xf32>
    %c0_7 = arith.constant 0 : index
    %c0_8 = arith.constant 0 : index
    %18 = vector.load %arg5[%c0_7, %c0_8] : memref<2x32xf32, #tpu.memory_space<vmem>>, vector<2x32xf32>
    %cst = arith.constant dense<0.000000e+00> : vector<2x128xf32>
    %19 = tpu.matmul %18, %4, %cst {dimension_numbers = #tpu.dot_dimension_numbers<[1], [0], [0], [1], [0, 0, 1, 1], [], []>} : vector<2x32xf32>, vector<32x128xf32>, vector<2x128xf32> -> vector<2x128xf32>
    %20 = arith.addf %17, %19 : vector<2x128xf32>
    %21 = math.tanh %20 : vector<2x128xf32>
    %22 = arith.negf %20 : vector<2x128xf32>
    %23 = math.exp %22 : vector<2x128xf32>
    %cst_9 = arith.constant 1.000000e+00 : f32
    %24 = vector.broadcast %cst_9 : f32 to vector<2x128xf32>
    %25 = arith.addf %24, %23 : vector<2x128xf32>
    %26 = arith.divf %24, %25 : vector<2x128xf32>
    %27 = arith.select %10, %21, %26 : vector<2x128xi1>, vector<2x128xf32>
    %28 = vector.extract_strided_slice %27 {offsets = [0, 0], sizes = [2, 32], strides = [1, 1]} : vector<2x128xf32> to vector<2x32xf32>
    %29 = vector.extract_strided_slice %27 {offsets = [0, 32], sizes = [2, 32], strides = [1, 1]} : vector<2x128xf32> to vector<2x32xf32>
    %30 = vector.extract_strided_slice %27 {offsets = [0, 64], sizes = [2, 32], strides = [1, 1]} : vector<2x128xf32> to vector<2x32xf32>
    %31 = vector.extract_strided_slice %27 {offsets = [0, 96], sizes = [2, 32], strides = [1, 1]} : vector<2x128xf32> to vector<2x32xf32>
    %c0_10 = arith.constant 0 : index
    %c0_11 = arith.constant 0 : index
    %32 = vector.load %arg6[%c0_10, %c0_11] : memref<2x32xf32, #tpu.memory_space<vmem>>, vector<2x32xf32>
    %33 = arith.mulf %29, %32 : vector<2x32xf32>
    %34 = arith.mulf %28, %30 : vector<2x32xf32>
    %35 = arith.addf %33, %34 : vector<2x32xf32>
    %36 = math.tanh %35 : vector<2x32xf32>
    %37 = arith.mulf %31, %36 : vector<2x32xf32>
    %c0_12 = arith.constant 0 : index
    %c0_13 = arith.constant 0 : index
    %38 = vector.load %arg6[%c0_12, %c0_13] : memref<2x32xf32, #tpu.memory_space<vmem>>, vector<2x32xf32>
    tpu.vector_store %arg6[%c0_12, %c0_13], %35 {strides = array<i32>} : memref<2x32xf32, #tpu.memory_space<vmem>>, vector<2x32xf32>,
    %c0_14 = arith.constant 0 : index
    %c0_15 = arith.constant 0 : index
    %39 = vector.load %arg5[%c0_14, %c0_15] : memref<2x32xf32, #tpu.memory_space<vmem>>, vector<2x32xf32>
    tpu.vector_store %arg5[%c0_14, %c0_15], %37 {strides = array<i32>} : memref<2x32xf32, #tpu.memory_space<vmem>>, vector<2x32xf32>,
    %c0_16 = arith.constant 0 : index
    %40 = arith.index_cast %14 : i32 to index
    %c0_17 = arith.constant 0 : index
    %c0_18 = arith.constant 0 : index
    %41 = vector.load %arg4[%c0_16, %40, %c0_17, %c0_18] : memref<1x8x2x32xf32, #tpu.memory_space<vmem>>, vector<1x1x2x32xf32>
    %42 = vector.shape_cast %41 : vector<1x1x2x32xf32> to vector<2x32xf32>
    %43 = vector.shape_cast %37 : vector<2x32xf32> to vector<1x1x2x32xf32>
    tpu.vector_store %arg4[%c0_16, %40, %c0_17, %c0_18], %43 {strides = array<i32>} : memref<1x8x2x32xf32, #tpu.memory_space<vmem>>, vector<1x1x2x32xf32>,
    %c1_i32 = arith.constant 1 : i32
    %c2_i32_19 = arith.constant 2 : i32
    %44 = arith.muli %c2_i32_19, %c1_i32 : i32
    %c7_i32_20 = arith.constant 7 : i32
    %45 = arith.subi %c7_i32_20, %44 : i32
    %46 = arith.muli %arg0, %45 : i32
    %47 = arith.addi %c1_i32, %46 : i32
    %c0_21 = arith.constant 0 : index
    %48 = arith.index_cast %47 : i32 to index
    %c0_22 = arith.constant 0 : index
    %c0_23 = arith.constant 0 : index
    %49 = vector.load %arg2[%c0_21, %48, %c0_22, %c0_23] : memref<1x8x2x128xf32, #tpu.memory_space<vmem>>, vector<1x1x2x128xf32>
    %50 = vector.shape_cast %49 : vector<1x1x2x128xf32> to vector<2x128xf32>
    %c0_24 = arith.constant 0 : index
    %c0_25 = arith.constant 0 : index
    %51 = vector.load %arg5[%c0_24, %c0_25] : memref<2x32xf32, #tpu.memory_space<vmem>>, vector<2x32xf32>
    %cst_26 = arith.constant dense<0.000000e+00> : vector<2x128xf32>
    %52 = tpu.matmul %51, %4, %cst_26 {dimension_numbers = #tpu.dot_dimension_numbers<[1], [0], [0], [1], [0, 0, 1, 1], [], []>} : vector<2x32xf32>, vector<32x128xf32>, vector<2x128xf32> -> vector<2x128xf32>
    %53 = arith.addf %50, %52 : vector<2x128xf32>
    %54 = math.tanh %53 : vector<2x128xf32>
    %55 = arith.negf %53 : vector<2x128xf32>
    %56 = math.exp %55 : vector<2x128xf32>
    %cst_27 = arith.constant 1.000000e+00 : f32
    %57 = vector.broadcast %cst_27 : f32 to vector<2x128xf32>
    %58 = arith.addf %57, %56 : vector<2x128xf32>
    %59 = arith.divf %57, %58 : vector<2x128xf32>
    %60 = arith.select %10, %54, %59 : vector<2x128xi1>, vector<2x128xf32>
    %61 = vector.extract_strided_slice %60 {offsets = [0, 0], sizes = [2, 32], strides = [1, 1]} : vector<2x128xf32> to vector<2x32xf32>
    %62 = vector.extract_strided_slice %60 {offsets = [0, 32], sizes = [2, 32], strides = [1, 1]} : vector<2x128xf32> to vector<2x32xf32>
    %63 = vector.extract_strided_slice %60 {offsets = [0, 64], sizes = [2, 32], strides = [1, 1]} : vector<2x128xf32> to vector<2x32xf32>
    %64 = vector.extract_strided_slice %60 {offsets = [0, 96], sizes = [2, 32], strides = [1, 1]} : vector<2x128xf32> to vector<2x32xf32>
    %c0_28 = arith.constant 0 : index
    %c0_29 = arith.constant 0 : index
    %65 = vector.load %arg6[%c0_28, %c0_29] : memref<2x32xf32, #tpu.memory_space<vmem>>, vector<2x32xf32>
    %66 = arith.mulf %62, %65 : vector<2x32xf32>
    %67 = arith.mulf %61, %63 : vector<2x32xf32>
    %68 = arith.addf %66, %67 : vector<2x32xf32>
    %69 = math.tanh %68 : vector<2x32xf32>
    %70 = arith.mulf %64, %69 : vector<2x32xf32>
    %c0_30 = arith.constant 0 : index
    %c0_31 = arith.constant 0 : index
    %71 = vector.load %arg6[%c0_30, %c0_31] : memref<2x32xf32, #tpu.memory_space<vmem>>, vector<2x32xf32>
    tpu.vector_store %arg6[%c0_30, %c0_31], %68 {strides = array<i32>} : memref<2x32xf32, #tpu.memory_space<vmem>>, vector<2x32xf32>,
    %c0_32 = arith.constant 0 : index
    %c0_33 = arith.constant 0 : index
    %72 = vector.load %arg5[%c0_32, %c0_33] : memref<2x32xf32, #tpu.memory_space<vmem>>, vector<2x32xf32>
    tpu.vector_store %arg5[%c0_32, %c0_33], %70 {strides = array<i32>} : memref<2x32xf32, #tpu.memory_space<vmem>>, vector<2x32xf32>,
    %c0_34 = arith.constant 0 : index
    %73 = arith.index_cast %47 : i32 to index
    %c0_35 = arith.constant 0 : index
    %c0_36 = arith.constant 0 : index
    %74 = vector.load %arg4[%c0_34, %73, %c0_35, %c0_36] : memref<1x8x2x32xf32, #tpu.memory_space<vmem>>, vector<1x1x2x32xf32>
    %75 = vector.shape_cast %74 : vector<1x1x2x32xf32> to vector<2x32xf32>
    %76 = vector.shape_cast %70 : vector<2x32xf32> to vector<1x1x2x32xf32>
    tpu.vector_store %arg4[%c0_34, %73, %c0_35, %c0_36], %76 {strides = array<i32>} : memref<1x8x2x32xf32, #tpu.memory_space<vmem>>, vector<1x1x2x32xf32>,
    %c2_i32_37 = arith.constant 2 : i32
    %c2_i32_38 = arith.constant 2 : i32
    %77 = arith.muli %c2_i32_38, %c2_i32_37 : i32
    %c7_i32_39 = arith.constant 7 : i32
    %78 = arith.subi %c7_i32_39, %77 : i32
    %79 = arith.muli %arg0, %78 : i32
    %80 = arith.addi %c2_i32_37, %79 : i32
    %c0_40 = arith.constant 0 : index
    %81 = arith.index_cast %80 : i32 to index
    %c0_41 = arith.constant 0 : index
    %c0_42 = arith.constant 0 : index
    %82 = vector.load %arg2[%c0_40, %81, %c0_41, %c0_42] : memref<1x8x2x128xf32, #tpu.memory_space<vmem>>, vector<1x1x2x128xf32>
    %83 = vector.shape_cast %82 : vector<1x1x2x128xf32> to vector<2x128xf32>
    %c0_43 = arith.constant 0 : index
    %c0_44 = arith.constant 0 : index
    %84 = vector.load %arg5[%c0_43, %c0_44] : memref<2x32xf32, #tpu.memory_space<vmem>>, vector<2x32xf32>
    %cst_45 = arith.constant dense<0.000000e+00> : vector<2x128xf32>
    %85 = tpu.matmul %84, %4, %cst_45 {dimension_numbers = #tpu.dot_dimension_numbers<[1], [0], [0], [1], [0, 0, 1, 1], [], []>} : vector<2x32xf32>, vector<32x128xf32>, vector<2x128xf32> -> vector<2x128xf32>
    %86 = arith.addf %83, %85 : vector<2x128xf32>
    %87 = math.tanh %86 : vector<2x128xf32>
    %88 = arith.negf %86 : vector<2x128xf32>
    %89 = math.exp %88 : vector<2x128xf32>
    %cst_46 = arith.constant 1.000000e+00 : f32
    %90 = vector.broadcast %cst_46 : f32 to vector<2x128xf32>
    %91 = arith.addf %90, %89 : vector<2x128xf32>
    %92 = arith.divf %90, %91 : vector<2x128xf32>
    %93 = arith.select %10, %87, %92 : vector<2x128xi1>, vector<2x128xf32>
    %94 = vector.extract_strided_slice %93 {offsets = [0, 0], sizes = [2, 32], strides = [1, 1]} : vector<2x128xf32> to vector<2x32xf32>
    %95 = vector.extract_strided_slice %93 {offsets = [0, 32], sizes = [2, 32], strides = [1, 1]} : vector<2x128xf32> to vector<2x32xf32>
    %96 = vector.extract_strided_slice %93 {offsets = [0, 64], sizes = [2, 32], strides = [1, 1]} : vector<2x128xf32> to vector<2x32xf32>
    %97 = vector.extract_strided_slice %93 {offsets = [0, 96], sizes = [2, 32], strides = [1, 1]} : vector<2x128xf32> to vector<2x32xf32>
    %c0_47 = arith.constant 0 : index
    %c0_48 = arith.constant 0 : index
    %98 = vector.load %arg6[%c0_47, %c0_48] : memref<2x32xf32, #tpu.memory_space<vmem>>, vector<2x32xf32>
    %99 = arith.mulf %95, %98 : vector<2x32xf32>
    %100 = arith.mulf %94, %96 : vector<2x32xf32>
    %101 = arith.addf %99, %100 : vector<2x32xf32>
    %102 = math.tanh %101 : vector<2x32xf32>
    %103 = arith.mulf %97, %102 : vector<2x32xf32>
    %c0_49 = arith.constant 0 : index
    %c0_50 = arith.constant 0 : index
    %104 = vector.load %arg6[%c0_49, %c0_50] : memref<2x32xf32, #tpu.memory_space<vmem>>, vector<2x32xf32>
    tpu.vector_store %arg6[%c0_49, %c0_50], %101 {strides = array<i32>} : memref<2x32xf32, #tpu.memory_space<vmem>>, vector<2x32xf32>,
    %c0_51 = arith.constant 0 : index
    %c0_52 = arith.constant 0 : index
    %105 = vector.load %arg5[%c0_51, %c0_52] : memref<2x32xf32, #tpu.memory_space<vmem>>, vector<2x32xf32>
    tpu.vector_store %arg5[%c0_51, %c0_52], %103 {strides = array<i32>} : memref<2x32xf32, #tpu.memory_space<vmem>>, vector<2x32xf32>,
    %c0_53 = arith.constant 0 : index
    %106 = arith.index_cast %80 : i32 to index
    %c0_54 = arith.constant 0 : index
    %c0_55 = arith.constant 0 : index
    %107 = vector.load %arg4[%c0_53, %106, %c0_54, %c0_55] : memref<1x8x2x32xf32, #tpu.memory_space<vmem>>, vector<1x1x2x32xf32>
    %108 = vector.shape_cast %107 : vector<1x1x2x32xf32> to vector<2x32xf32>
    %109 = vector.shape_cast %103 : vector<2x32xf32> to vector<1x1x2x32xf32>
    tpu.vector_store %arg4[%c0_53, %106, %c0_54, %c0_55], %109 {strides = array<i32>} : memref<1x8x2x32xf32, #tpu.memory_space<vmem>>, vector<1x1x2x32xf32>,
    %c3_i32 = arith.constant 3 : i32
    %c2_i32_56 = arith.constant 2 : i32
    %110 = arith.muli %c2_i32_56, %c3_i32 : i32
    %c7_i32_57 = arith.constant 7 : i32
    %111 = arith.subi %c7_i32_57, %110 : i32
    %112 = arith.muli %arg0, %111 : i32
    %113 = arith.addi %c3_i32, %112 : i32
    %c0_58 = arith.constant 0 : index
    %114 = arith.index_cast %113 : i32 to index
    %c0_59 = arith.constant 0 : index
    %c0_60 = arith.constant 0 : index
    %115 = vector.load %arg2[%c0_58, %114, %c0_59, %c0_60] : memref<1x8x2x128xf32, #tpu.memory_space<vmem>>, vector<1x1x2x128xf32>
    %116 = vector.shape_cast %115 : vector<1x1x2x128xf32> to vector<2x128xf32>
    %c0_61 = arith.constant 0 : index
    %c0_62 = arith.constant 0 : index
    %117 = vector.load %arg5[%c0_61, %c0_62] : memref<2x32xf32, #tpu.memory_space<vmem>>, vector<2x32xf32>
    %cst_63 = arith.constant dense<0.000000e+00> : vector<2x128xf32>
    %118 = tpu.matmul %117, %4, %cst_63 {dimension_numbers = #tpu.dot_dimension_numbers<[1], [0], [0], [1], [0, 0, 1, 1], [], []>} : vector<2x32xf32>, vector<32x128xf32>, vector<2x128xf32> -> vector<2x128xf32>
    %119 = arith.addf %116, %118 : vector<2x128xf32>
    %120 = math.tanh %119 : vector<2x128xf32>
    %121 = arith.negf %119 : vector<2x128xf32>
    %122 = math.exp %121 : vector<2x128xf32>
    %cst_64 = arith.constant 1.000000e+00 : f32
    %123 = vector.broadcast %cst_64 : f32 to vector<2x128xf32>
    %124 = arith.addf %123, %122 : vector<2x128xf32>
    %125 = arith.divf %123, %124 : vector<2x128xf32>
    %126 = arith.select %10, %120, %125 : vector<2x128xi1>, vector<2x128xf32>
    %127 = vector.extract_strided_slice %126 {offsets = [0, 0], sizes = [2, 32], strides = [1, 1]} : vector<2x128xf32> to vector<2x32xf32>
    %128 = vector.extract_strided_slice %126 {offsets = [0, 32], sizes = [2, 32], strides = [1, 1]} : vector<2x128xf32> to vector<2x32xf32>
    %129 = vector.extract_strided_slice %126 {offsets = [0, 64], sizes = [2, 32], strides = [1, 1]} : vector<2x128xf32> to vector<2x32xf32>
    %130 = vector.extract_strided_slice %126 {offsets = [0, 96], sizes = [2, 32], strides = [1, 1]} : vector<2x128xf32> to vector<2x32xf32>
    %c0_65 = arith.constant 0 : index
    %c0_66 = arith.constant 0 : index
    %131 = vector.load %arg6[%c0_65, %c0_66] : memref<2x32xf32, #tpu.memory_space<vmem>>, vector<2x32xf32>
    %132 = arith.mulf %128, %131 : vector<2x32xf32>
    %133 = arith.mulf %127, %129 : vector<2x32xf32>
    %134 = arith.addf %132, %133 : vector<2x32xf32>
    %135 = math.tanh %134 : vector<2x32xf32>
    %136 = arith.mulf %130, %135 : vector<2x32xf32>
    %c0_67 = arith.constant 0 : index
    %c0_68 = arith.constant 0 : index
    %137 = vector.load %arg6[%c0_67, %c0_68] : memref<2x32xf32, #tpu.memory_space<vmem>>, vector<2x32xf32>
    tpu.vector_store %arg6[%c0_67, %c0_68], %134 {strides = array<i32>} : memref<2x32xf32, #tpu.memory_space<vmem>>, vector<2x32xf32>,
    %c0_69 = arith.constant 0 : index
    %c0_70 = arith.constant 0 : index
    %138 = vector.load %arg5[%c0_69, %c0_70] : memref<2x32xf32, #tpu.memory_space<vmem>>, vector<2x32xf32>
    tpu.vector_store %arg5[%c0_69, %c0_70], %136 {strides = array<i32>} : memref<2x32xf32, #tpu.memory_space<vmem>>, vector<2x32xf32>,
    %c0_71 = arith.constant 0 : index
    %139 = arith.index_cast %113 : i32 to index
    %c0_72 = arith.constant 0 : index
    %c0_73 = arith.constant 0 : index
    %140 = vector.load %arg4[%c0_71, %139, %c0_72, %c0_73] : memref<1x8x2x32xf32, #tpu.memory_space<vmem>>, vector<1x1x2x32xf32>
    %141 = vector.shape_cast %140 : vector<1x1x2x32xf32> to vector<2x32xf32>
    %142 = vector.shape_cast %136 : vector<2x32xf32> to vector<1x1x2x32xf32>
    tpu.vector_store %arg4[%c0_71, %139, %c0_72, %c0_73], %142 {strides = array<i32>} : memref<1x8x2x32xf32, #tpu.memory_space<vmem>>, vector<1x1x2x32xf32>,
    %c4_i32 = arith.constant 4 : i32
    %c2_i32_74 = arith.constant 2 : i32
    %143 = arith.muli %c2_i32_74, %c4_i32 : i32
    %c7_i32_75 = arith.constant 7 : i32
    %144 = arith.subi %c7_i32_75, %143 : i32
    %145 = arith.muli %arg0, %144 : i32
    %146 = arith.addi %c4_i32, %145 : i32
    %c0_76 = arith.constant 0 : index
    %147 = arith.index_cast %146 : i32 to index
    %c0_77 = arith.constant 0 : index
    %c0_78 = arith.constant 0 : index
    %148 = vector.load %arg2[%c0_76, %147, %c0_77, %c0_78] : memref<1x8x2x128xf32, #tpu.memory_space<vmem>>, vector<1x1x2x128xf32>
    %149 = vector.shape_cast %148 : vector<1x1x2x128xf32> to vector<2x128xf32>
    %c0_79 = arith.constant 0 : index
    %c0_80 = arith.constant 0 : index
    %150 = vector.load %arg5[%c0_79, %c0_80] : memref<2x32xf32, #tpu.memory_space<vmem>>, vector<2x32xf32>
    %cst_81 = arith.constant dense<0.000000e+00> : vector<2x128xf32>
    %151 = tpu.matmul %150, %4, %cst_81 {dimension_numbers = #tpu.dot_dimension_numbers<[1], [0], [0], [1], [0, 0, 1, 1], [], []>} : vector<2x32xf32>, vector<32x128xf32>, vector<2x128xf32> -> vector<2x128xf32>
    %152 = arith.addf %149, %151 : vector<2x128xf32>
    %153 = math.tanh %152 : vector<2x128xf32>
    %154 = arith.negf %152 : vector<2x128xf32>
    %155 = math.exp %154 : vector<2x128xf32>
    %cst_82 = arith.constant 1.000000e+00 : f32
    %156 = vector.broadcast %cst_82 : f32 to vector<2x128xf32>
    %157 = arith.addf %156, %155 : vector<2x128xf32>
    %158 = arith.divf %156, %157 : vector<2x128xf32>
    %159 = arith.select %10, %153, %158 : vector<2x128xi1>, vector<2x128xf32>
    %160 = vector.extract_strided_slice %159 {offsets = [0, 0], sizes = [2, 32], strides = [1, 1]} : vector<2x128xf32> to vector<2x32xf32>
    %161 = vector.extract_strided_slice %159 {offsets = [0, 32], sizes = [2, 32], strides = [1, 1]} : vector<2x128xf32> to vector<2x32xf32>
    %162 = vector.extract_strided_slice %159 {offsets = [0, 64], sizes = [2, 32], strides = [1, 1]} : vector<2x128xf32> to vector<2x32xf32>
    %163 = vector.extract_strided_slice %159 {offsets = [0, 96], sizes = [2, 32], strides = [1, 1]} : vector<2x128xf32> to vector<2x32xf32>
    %c0_83 = arith.constant 0 : index
    %c0_84 = arith.constant 0 : index
    %164 = vector.load %arg6[%c0_83, %c0_84] : memref<2x32xf32, #tpu.memory_space<vmem>>, vector<2x32xf32>
    %165 = arith.mulf %161, %164 : vector<2x32xf32>
    %166 = arith.mulf %160, %162 : vector<2x32xf32>
    %167 = arith.addf %165, %166 : vector<2x32xf32>
    %168 = math.tanh %167 : vector<2x32xf32>
    %169 = arith.mulf %163, %168 : vector<2x32xf32>
    %c0_85 = arith.constant 0 : index
    %c0_86 = arith.constant 0 : index
    %170 = vector.load %arg6[%c0_85, %c0_86] : memref<2x32xf32, #tpu.memory_space<vmem>>, vector<2x32xf32>
    tpu.vector_store %arg6[%c0_85, %c0_86], %167 {strides = array<i32>} : memref<2x32xf32, #tpu.memory_space<vmem>>, vector<2x32xf32>,
    %c0_87 = arith.constant 0 : index
    %c0_88 = arith.constant 0 : index
    %171 = vector.load %arg5[%c0_87, %c0_88] : memref<2x32xf32, #tpu.memory_space<vmem>>, vector<2x32xf32>
    tpu.vector_store %arg5[%c0_87, %c0_88], %169 {strides = array<i32>} : memref<2x32xf32, #tpu.memory_space<vmem>>, vector<2x32xf32>,
    %c0_89 = arith.constant 0 : index
    %172 = arith.index_cast %146 : i32 to index
    %c0_90 = arith.constant 0 : index
    %c0_91 = arith.constant 0 : index
    %173 = vector.load %arg4[%c0_89, %172, %c0_90, %c0_91] : memref<1x8x2x32xf32, #tpu.memory_space<vmem>>, vector<1x1x2x32xf32>
    %174 = vector.shape_cast %173 : vector<1x1x2x32xf32> to vector<2x32xf32>
    %175 = vector.shape_cast %169 : vector<2x32xf32> to vector<1x1x2x32xf32>
    tpu.vector_store %arg4[%c0_89, %172, %c0_90, %c0_91], %175 {strides = array<i32>} : memref<1x8x2x32xf32, #tpu.memory_space<vmem>>, vector<1x1x2x32xf32>,
    %c5_i32 = arith.constant 5 : i32
    %c2_i32_92 = arith.constant 2 : i32
    %176 = arith.muli %c2_i32_92, %c5_i32 : i32
    %c7_i32_93 = arith.constant 7 : i32
    %177 = arith.subi %c7_i32_93, %176 : i32
    %178 = arith.muli %arg0, %177 : i32
    %179 = arith.addi %c5_i32, %178 : i32
    %c0_94 = arith.constant 0 : index
    %180 = arith.index_cast %179 : i32 to index
    %c0_95 = arith.constant 0 : index
    %c0_96 = arith.constant 0 : index
    %181 = vector.load %arg2[%c0_94, %180, %c0_95, %c0_96] : memref<1x8x2x128xf32, #tpu.memory_space<vmem>>, vector<1x1x2x128xf32>
    %182 = vector.shape_cast %181 : vector<1x1x2x128xf32> to vector<2x128xf32>
    %c0_97 = arith.constant 0 : index
    %c0_98 = arith.constant 0 : index
    %183 = vector.load %arg5[%c0_97, %c0_98] : memref<2x32xf32, #tpu.memory_space<vmem>>, vector<2x32xf32>
    %cst_99 = arith.constant dense<0.000000e+00> : vector<2x128xf32>
    %184 = tpu.matmul %183, %4, %cst_99 {dimension_numbers = #tpu.dot_dimension_numbers<[1], [0], [0], [1], [0, 0, 1, 1], [], []>} : vector<2x32xf32>, vector<32x128xf32>, vector<2x128xf32> -> vector<2x128xf32>
    %185 = arith.addf %182, %184 : vector<2x128xf32>
    %186 = math.tanh %185 : vector<2x128xf32>
    %187 = arith.negf %185 : vector<2x128xf32>
    %188 = math.exp %187 : vector<2x128xf32>
    %cst_100 = arith.constant 1.000000e+00 : f32
    %189 = vector.broadcast %cst_100 : f32 to vector<2x128xf32>
    %190 = arith.addf %189, %188 : vector<2x128xf32>
    %191 = arith.divf %189, %190 : vector<2x128xf32>
    %192 = arith.select %10, %186, %191 : vector<2x128xi1>, vector<2x128xf32>
    %193 = vector.extract_strided_slice %192 {offsets = [0, 0], sizes = [2, 32], strides = [1, 1]} : vector<2x128xf32> to vector<2x32xf32>
    %194 = vector.extract_strided_slice %192 {offsets = [0, 32], sizes = [2, 32], strides = [1, 1]} : vector<2x128xf32> to vector<2x32xf32>
    %195 = vector.extract_strided_slice %192 {offsets = [0, 64], sizes = [2, 32], strides = [1, 1]} : vector<2x128xf32> to vector<2x32xf32>
    %196 = vector.extract_strided_slice %192 {offsets = [0, 96], sizes = [2, 32], strides = [1, 1]} : vector<2x128xf32> to vector<2x32xf32>
    %c0_101 = arith.constant 0 : index
    %c0_102 = arith.constant 0 : index
    %197 = vector.load %arg6[%c0_101, %c0_102] : memref<2x32xf32, #tpu.memory_space<vmem>>, vector<2x32xf32>
    %198 = arith.mulf %194, %197 : vector<2x32xf32>
    %199 = arith.mulf %193, %195 : vector<2x32xf32>
    %200 = arith.addf %198, %199 : vector<2x32xf32>
    %201 = math.tanh %200 : vector<2x32xf32>
    %202 = arith.mulf %196, %201 : vector<2x32xf32>
    %c0_103 = arith.constant 0 : index
    %c0_104 = arith.constant 0 : index
    %203 = vector.load %arg6[%c0_103, %c0_104] : memref<2x32xf32, #tpu.memory_space<vmem>>, vector<2x32xf32>
    tpu.vector_store %arg6[%c0_103, %c0_104], %200 {strides = array<i32>} : memref<2x32xf32, #tpu.memory_space<vmem>>, vector<2x32xf32>,
    %c0_105 = arith.constant 0 : index
    %c0_106 = arith.constant 0 : index
    %204 = vector.load %arg5[%c0_105, %c0_106] : memref<2x32xf32, #tpu.memory_space<vmem>>, vector<2x32xf32>
    tpu.vector_store %arg5[%c0_105, %c0_106], %202 {strides = array<i32>} : memref<2x32xf32, #tpu.memory_space<vmem>>, vector<2x32xf32>,
    %c0_107 = arith.constant 0 : index
    %205 = arith.index_cast %179 : i32 to index
    %c0_108 = arith.constant 0 : index
    %c0_109 = arith.constant 0 : index
    %206 = vector.load %arg4[%c0_107, %205, %c0_108, %c0_109] : memref<1x8x2x32xf32, #tpu.memory_space<vmem>>, vector<1x1x2x32xf32>
    %207 = vector.shape_cast %206 : vector<1x1x2x32xf32> to vector<2x32xf32>
    %208 = vector.shape_cast %202 : vector<2x32xf32> to vector<1x1x2x32xf32>
    tpu.vector_store %arg4[%c0_107, %205, %c0_108, %c0_109], %208 {strides = array<i32>} : memref<1x8x2x32xf32, #tpu.memory_space<vmem>>, vector<1x1x2x32xf32>,
    %c6_i32 = arith.constant 6 : i32
    %c2_i32_110 = arith.constant 2 : i32
    %209 = arith.muli %c2_i32_110, %c6_i32 : i32
    %c7_i32_111 = arith.constant 7 : i32
    %210 = arith.subi %c7_i32_111, %209 : i32
    %211 = arith.muli %arg0, %210 : i32
    %212 = arith.addi %c6_i32, %211 : i32
    %c0_112 = arith.constant 0 : index
    %213 = arith.index_cast %212 : i32 to index
    %c0_113 = arith.constant 0 : index
    %c0_114 = arith.constant 0 : index
    %214 = vector.load %arg2[%c0_112, %213, %c0_113, %c0_114] : memref<1x8x2x128xf32, #tpu.memory_space<vmem>>, vector<1x1x2x128xf32>
    %215 = vector.shape_cast %214 : vector<1x1x2x128xf32> to vector<2x128xf32>
    %c0_115 = arith.constant 0 : index
    %c0_116 = arith.constant 0 : index
    %216 = vector.load %arg5[%c0_115, %c0_116] : memref<2x32xf32, #tpu.memory_space<vmem>>, vector<2x32xf32>
    %cst_117 = arith.constant dense<0.000000e+00> : vector<2x128xf32>
    %217 = tpu.matmul %216, %4, %cst_117 {dimension_numbers = #tpu.dot_dimension_numbers<[1], [0], [0], [1], [0, 0, 1, 1], [], []>} : vector<2x32xf32>, vector<32x128xf32>, vector<2x128xf32> -> vector<2x128xf32>
    %218 = arith.addf %215, %217 : vector<2x128xf32>
    %219 = math.tanh %218 : vector<2x128xf32>
    %220 = arith.negf %218 : vector<2x128xf32>
    %221 = math.exp %220 : vector<2x128xf32>
    %cst_118 = arith.constant 1.000000e+00 : f32
    %222 = vector.broadcast %cst_118 : f32 to vector<2x128xf32>
    %223 = arith.addf %222, %221 : vector<2x128xf32>
    %224 = arith.divf %222, %223 : vector<2x128xf32>
    %225 = arith.select %10, %219, %224 : vector<2x128xi1>, vector<2x128xf32>
    %226 = vector.extract_strided_slice %225 {offsets = [0, 0], sizes = [2, 32], strides = [1, 1]} : vector<2x128xf32> to vector<2x32xf32>
    %227 = vector.extract_strided_slice %225 {offsets = [0, 32], sizes = [2, 32], strides = [1, 1]} : vector<2x128xf32> to vector<2x32xf32>
    %228 = vector.extract_strided_slice %225 {offsets = [0, 64], sizes = [2, 32], strides = [1, 1]} : vector<2x128xf32> to vector<2x32xf32>
    %229 = vector.extract_strided_slice %225 {offsets = [0, 96], sizes = [2, 32], strides = [1, 1]} : vector<2x128xf32> to vector<2x32xf32>
    %c0_119 = arith.constant 0 : index
    %c0_120 = arith.constant 0 : index
    %230 = vector.load %arg6[%c0_119, %c0_120] : memref<2x32xf32, #tpu.memory_space<vmem>>, vector<2x32xf32>
    %231 = arith.mulf %227, %230 : vector<2x32xf32>
    %232 = arith.mulf %226, %228 : vector<2x32xf32>
    %233 = arith.addf %231, %232 : vector<2x32xf32>
    %234 = math.tanh %233 : vector<2x32xf32>
    %235 = arith.mulf %229, %234 : vector<2x32xf32>
    %c0_121 = arith.constant 0 : index
    %c0_122 = arith.constant 0 : index
    %236 = vector.load %arg6[%c0_121, %c0_122] : memref<2x32xf32, #tpu.memory_space<vmem>>, vector<2x32xf32>
    tpu.vector_store %arg6[%c0_121, %c0_122], %233 {strides = array<i32>} : memref<2x32xf32, #tpu.memory_space<vmem>>, vector<2x32xf32>,
    %c0_123 = arith.constant 0 : index
    %c0_124 = arith.constant 0 : index
    %237 = vector.load %arg5[%c0_123, %c0_124] : memref<2x32xf32, #tpu.memory_space<vmem>>, vector<2x32xf32>
    tpu.vector_store %arg5[%c0_123, %c0_124], %235 {strides = array<i32>} : memref<2x32xf32, #tpu.memory_space<vmem>>, vector<2x32xf32>,
    %c0_125 = arith.constant 0 : index
    %238 = arith.index_cast %212 : i32 to index
    %c0_126 = arith.constant 0 : index
    %c0_127 = arith.constant 0 : index
    %239 = vector.load %arg4[%c0_125, %238, %c0_126, %c0_127] : memref<1x8x2x32xf32, #tpu.memory_space<vmem>>, vector<1x1x2x32xf32>
    %240 = vector.shape_cast %239 : vector<1x1x2x32xf32> to vector<2x32xf32>
    %241 = vector.shape_cast %235 : vector<2x32xf32> to vector<1x1x2x32xf32>
    tpu.vector_store %arg4[%c0_125, %238, %c0_126, %c0_127], %241 {strides = array<i32>} : memref<1x8x2x32xf32, #tpu.memory_space<vmem>>, vector<1x1x2x32xf32>,
    %c7_i32_128 = arith.constant 7 : i32
    %c2_i32_129 = arith.constant 2 : i32
    %242 = arith.muli %c2_i32_129, %c7_i32_128 : i32
    %c7_i32_130 = arith.constant 7 : i32
    %243 = arith.subi %c7_i32_130, %242 : i32
    %244 = arith.muli %arg0, %243 : i32
    %245 = arith.addi %c7_i32_128, %244 : i32
    %c0_131 = arith.constant 0 : index
    %246 = arith.index_cast %245 : i32 to index
    %c0_132 = arith.constant 0 : index
    %c0_133 = arith.constant 0 : index
    %247 = vector.load %arg2[%c0_131, %246, %c0_132, %c0_133] : memref<1x8x2x128xf32, #tpu.memory_space<vmem>>, vector<1x1x2x128xf32>
    %248 = vector.shape_cast %247 : vector<1x1x2x128xf32> to vector<2x128xf32>
    %c0_134 = arith.constant 0 : index
    %c0_135 = arith.constant 0 : index
    %249 = vector.load %arg5[%c0_134, %c0_135] : memref<2x32xf32, #tpu.memory_space<vmem>>, vector<2x32xf32>
    %cst_136 = arith.constant dense<0.000000e+00> : vector<2x128xf32>
    %250 = tpu.matmul %249, %4, %cst_136 {dimension_numbers = #tpu.dot_dimension_numbers<[1], [0], [0], [1], [0, 0, 1, 1], [], []>} : vector<2x32xf32>, vector<32x128xf32>, vector<2x128xf32> -> vector<2x128xf32>
    %251 = arith.addf %248, %250 : vector<2x128xf32>
    %252 = math.tanh %251 : vector<2x128xf32>
    %253 = arith.negf %251 : vector<2x128xf32>
    %254 = math.exp %253 : vector<2x128xf32>
    %cst_137 = arith.constant 1.000000e+00 : f32
    %255 = vector.broadcast %cst_137 : f32 to vector<2x128xf32>
    %256 = arith.addf %255, %254 : vector<2x128xf32>
    %257 = arith.divf %255, %256 : vector<2x128xf32>
    %258 = arith.select %10, %252, %257 : vector<2x128xi1>, vector<2x128xf32>
    %259 = vector.extract_strided_slice %258 {offsets = [0, 0], sizes = [2, 32], strides = [1, 1]} : vector<2x128xf32> to vector<2x32xf32>
    %260 = vector.extract_strided_slice %258 {offsets = [0, 32], sizes = [2, 32], strides = [1, 1]} : vector<2x128xf32> to vector<2x32xf32>
    %261 = vector.extract_strided_slice %258 {offsets = [0, 64], sizes = [2, 32], strides = [1, 1]} : vector<2x128xf32> to vector<2x32xf32>
    %262 = vector.extract_strided_slice %258 {offsets = [0, 96], sizes = [2, 32], strides = [1, 1]} : vector<2x128xf32> to vector<2x32xf32>
    %c0_138 = arith.constant 0 : index
    %c0_139 = arith.constant 0 : index
    %263 = vector.load %arg6[%c0_138, %c0_139] : memref<2x32xf32, #tpu.memory_space<vmem>>, vector<2x32xf32>
    %264 = arith.mulf %260, %263 : vector<2x32xf32>
    %265 = arith.mulf %259, %261 : vector<2x32xf32>
    %266 = arith.addf %264, %265 : vector<2x32xf32>
    %267 = math.tanh %266 : vector<2x32xf32>
    %268 = arith.mulf %262, %267 : vector<2x32xf32>
    %c0_140 = arith.constant 0 : index
    %c0_141 = arith.constant 0 : index
    %269 = vector.load %arg6[%c0_140, %c0_141] : memref<2x32xf32, #tpu.memory_space<vmem>>, vector<2x32xf32>
    tpu.vector_store %arg6[%c0_140, %c0_141], %266 {strides = array<i32>} : memref<2x32xf32, #tpu.memory_space<vmem>>, vector<2x32xf32>,
    %c0_142 = arith.constant 0 : index
    %c0_143 = arith.constant 0 : index
    %270 = vector.load %arg5[%c0_142, %c0_143] : memref<2x32xf32, #tpu.memory_space<vmem>>, vector<2x32xf32>
    tpu.vector_store %arg5[%c0_142, %c0_143], %268 {strides = array<i32>} : memref<2x32xf32, #tpu.memory_space<vmem>>, vector<2x32xf32>,
    %c0_144 = arith.constant 0 : index
    %271 = arith.index_cast %245 : i32 to index
    %c0_145 = arith.constant 0 : index
    %c0_146 = arith.constant 0 : index
    %272 = vector.load %arg4[%c0_144, %271, %c0_145, %c0_146] : memref<1x8x2x32xf32, #tpu.memory_space<vmem>>, vector<1x1x2x32xf32>
    %273 = vector.shape_cast %272 : vector<1x1x2x32xf32> to vector<2x32xf32>
    %274 = vector.shape_cast %268 : vector<2x32xf32> to vector<1x1x2x32xf32>
    tpu.vector_store %arg4[%c0_144, %271, %c0_145, %c0_146], %274 {strides = array<i32>} : memref<1x8x2x32xf32, #tpu.memory_space<vmem>>, vector<1x1x2x32xf32>,
    %c8_i32 = arith.constant 8 : i32
    return
  }
  func.func @transform_0(%arg0: i32, %arg1: i32) -> (i32, i32, i32, i32) {
    %c2_i32 = arith.constant 2 : i32
    %0 = arith.muli %c2_i32, %arg1 : i32
    %c0_i32 = arith.constant 0 : i32
    %1 = arith.subi %c0_i32, %0 : i32
    %2 = arith.muli %arg0, %1 : i32
    %3 = arith.addi %arg1, %2 : i32
    %c0_i32_0 = arith.constant 0 : i32
    %c0_i32_1 = arith.constant 0 : i32
    %c0_i32_2 = arith.constant 0 : i32
    return %arg0, %3, %c0_i32_0, %c0_i32_1 : i32, i32, i32, i32
  }
  func.func @transform_1(%arg0: i32, %arg1: i32) -> (i32, i32, i32) {
    %c0_i32 = arith.constant 0 : i32
    %c0_i32_0 = arith.constant 0 : i32
    %c0_i32_1 = arith.constant 0 : i32
    return %arg0, %c0_i32, %c0_i32_0 : i32, i32, i32
  }
  func.func @transform_2(%arg0: i32, %arg1: i32) -> (i32, i32, i32, i32) {
    %c2_i32 = arith.constant 2 : i32
    %0 = arith.muli %c2_i32, %arg1 : i32
    %c0_i32 = arith.constant 0 : i32
    %1 = arith.subi %c0_i32, %0 : i32
    %2 = arith.muli %arg0, %1 : i32
    %3 = arith.addi %arg1, %2 : i32
    %c0_i32_0 = arith.constant 0 : i32
    %c0_i32_1 = arith.constant 0 : i32
    %c0_i32_2 = arith.constant 0 : i32
    return %arg0, %3, %c0_i32_0, %c0_i32_1 : i32, i32, i32, i32
  }
}

module attributes {stable_mosaic.version = 11 : i64} {
  func.func @head_kernel(%arg0: i32, %arg1: memref<16x64xf32, #tpu.memory_space<vmem>>, %arg2: memref<64x32xf32, #tpu.memory_space<vmem>>, %arg3: memref<1x32xf32, #tpu.memory_space<vmem>>, %arg4: memref<32x2xf32, #tpu.memory_space<vmem>>, %arg5: memref<1x2xf32, #tpu.memory_space<vmem>>, %arg6: memref<16x2xf32, #tpu.memory_space<vmem>>) attributes {dimension_semantics = [#tpu.dimension_semantics<parallel>], iteration_bounds = array<i64: 1>, scalar_prefetch = 0 : i64, scratch_operands = 0 : i64, tpu.core_type = #tpu.core_type<tc>, window_params = [{transform_indices = @transform_0, window_bounds = array<i64: 16, 64>}, {pipeline_mode = #tpu.pipeline_mode<synchronous>, transform_indices = @transform_1, window_bounds = array<i64: 64, 32>}, {pipeline_mode = #tpu.pipeline_mode<synchronous>, transform_indices = @transform_2, window_bounds = array<i64: 1, 32>}, {pipeline_mode = #tpu.pipeline_mode<synchronous>, transform_indices = @transform_3, window_bounds = array<i64: 32, 2>}, {pipeline_mode = #tpu.pipeline_mode<synchronous>, transform_indices = @transform_4, window_bounds = array<i64: 1, 2>}, {transform_indices = @transform_5, window_bounds = array<i64: 16, 2>}]} {
    %c0 = arith.constant 0 : index
    %c0_0 = arith.constant 0 : index
    %0 = vector.load %arg1[%c0, %c0_0] : memref<16x64xf32, #tpu.memory_space<vmem>>, vector<16x64xf32>
    %cst = arith.constant 0.000000e+00 : f32
    %1 = vector.broadcast %cst : f32 to vector<16x64xf32>
    %2 = arith.cmpf ogt, %0, %1 : vector<16x64xf32>
    %cst_1 = arith.constant 0.00999999977 : f32
    %3 = vector.broadcast %cst_1 : f32 to vector<16x64xf32>
    %4 = arith.mulf %3, %0 : vector<16x64xf32>
    %5 = arith.select %2, %0, %4 : vector<16x64xi1>, vector<16x64xf32>
    %c0_2 = arith.constant 0 : index
    %c0_3 = arith.constant 0 : index
    %6 = vector.load %arg2[%c0_2, %c0_3] : memref<64x32xf32, #tpu.memory_space<vmem>>, vector<64x32xf32>
    %cst_4 = arith.constant dense<0.000000e+00> : vector<16x32xf32>
    %7 = tpu.matmul %5, %6, %cst_4 {dimension_numbers = #tpu.dot_dimension_numbers<[1], [0], [0], [1], [0, 0, 1, 1], [], []>} : vector<16x64xf32>, vector<64x32xf32>, vector<16x32xf32> -> vector<16x32xf32>
    %c0_5 = arith.constant 0 : index
    %c0_6 = arith.constant 0 : index
    %8 = vector.load %arg3[%c0_5, %c0_6] : memref<1x32xf32, #tpu.memory_space<vmem>>, vector<1x32xf32>
    %9 = vector.broadcast %8 : vector<1x32xf32> to vector<16x32xf32>
    %10 = arith.addf %7, %9 : vector<16x32xf32>
    %cst_7 = arith.constant 0.000000e+00 : f32
    %11 = vector.broadcast %cst_7 : f32 to vector<16x32xf32>
    %12 = arith.cmpf ogt, %10, %11 : vector<16x32xf32>
    %cst_8 = arith.constant 0.00999999977 : f32
    %13 = vector.broadcast %cst_8 : f32 to vector<16x32xf32>
    %14 = arith.mulf %13, %10 : vector<16x32xf32>
    %15 = arith.select %12, %10, %14 : vector<16x32xi1>, vector<16x32xf32>
    %c0_9 = arith.constant 0 : index
    %c0_10 = arith.constant 0 : index
    %16 = vector.load %arg4[%c0_9, %c0_10] : memref<32x2xf32, #tpu.memory_space<vmem>>, vector<32x2xf32>
    %cst_11 = arith.constant dense<0.000000e+00> : vector<16x2xf32>
    %17 = tpu.matmul %15, %16, %cst_11 {dimension_numbers = #tpu.dot_dimension_numbers<[1], [0], [0], [1], [0, 0, 1, 1], [], []>} : vector<16x32xf32>, vector<32x2xf32>, vector<16x2xf32> -> vector<16x2xf32>
    %c0_12 = arith.constant 0 : index
    %c0_13 = arith.constant 0 : index
    %18 = vector.load %arg5[%c0_12, %c0_13] : memref<1x2xf32, #tpu.memory_space<vmem>>, vector<1x2xf32>
    %19 = vector.broadcast %18 : vector<1x2xf32> to vector<16x2xf32>
    %20 = arith.addf %17, %19 : vector<16x2xf32>
    %21 = arith.negf %20 : vector<16x2xf32>
    %22 = math.exp %21 : vector<16x2xf32>
    %cst_14 = arith.constant 1.000000e+00 : f32
    %23 = vector.broadcast %cst_14 : f32 to vector<16x2xf32>
    %24 = arith.addf %23, %22 : vector<16x2xf32>
    %25 = arith.divf %23, %24 : vector<16x2xf32>
    %c0_15 = arith.constant 0 : index
    %c0_16 = arith.constant 0 : index
    %26 = vector.load %arg6[%c0_15, %c0_16] : memref<16x2xf32, #tpu.memory_space<vmem>>, vector<16x2xf32>
    tpu.vector_store %arg6[%c0_15, %c0_16], %25 {strides = array<i32>} : memref<16x2xf32, #tpu.memory_space<vmem>>, vector<16x2xf32>,
    return
  }
  func.func @transform_0(%arg0: i32) -> (i32, i32) {
    %c0_i32 = arith.constant 0 : i32
    %c0_i32_0 = arith.constant 0 : i32
    return %arg0, %c0_i32 : i32, i32
  }
  func.func @transform_1(%arg0: i32) -> (i32, i32) {
    %c0_i32 = arith.constant 0 : i32
    %c0_i32_0 = arith.constant 0 : i32
    %c0_i32_1 = arith.constant 0 : i32
    return %c0_i32, %c0_i32_0 : i32, i32
  }
  func.func @transform_2(%arg0: i32) -> (i32, i32) {
    %c0_i32 = arith.constant 0 : i32
    %c0_i32_0 = arith.constant 0 : i32
    %c0_i32_1 = arith.constant 0 : i32
    return %c0_i32, %c0_i32_0 : i32, i32
  }
  func.func @transform_3(%arg0: i32) -> (i32, i32) {
    %c0_i32 = arith.constant 0 : i32
    %c0_i32_0 = arith.constant 0 : i32
    %c0_i32_1 = arith.constant 0 : i32
    return %c0_i32, %c0_i32_0 : i32, i32
  }
  func.func @transform_4(%arg0: i32) -> (i32, i32) {
    %c0_i32 = arith.constant 0 : i32
    %c0_i32_0 = arith.constant 0 : i32
    %c0_i32_1 = arith.constant 0 : i32
    return %c0_i32, %c0_i32_0 : i32, i32
  }
  func.func @transform_5(%arg0: i32) -> (i32, i32) {
    %c0_i32 = arith.constant 0 : i32
    %c0_i32_0 = arith.constant 0 : i32
    return %arg0, %c0_i32 : i32, i32
  }
}

</mosaic_0001>

<bundles_post_ra>
// kernel: _model_apply.5
= control target key start
LH: loop header
LB: loop body
LE: loop exit
PB: predicated region body
PF: predicated region fallthrough
CT: control target
= control target key end

     0   :  { %vm43_vm1 = vcmask 523264   ;;  %vm142_vm5 = vcmask 261120   ;;  %vm236_vm6 = vcmask 15360   ;;  %s415_s1 = inlined_call_operand.vmem [shape: f32[64,32], index: 1, kind: input, shape index: {}]   ;;  %s416_s0 = inlined_call_operand.vmem [shape: f32[16,64], index: 0, kind: input, shape index: {}]   ;;  %s417_s3 = inlined_call_operand.vmem [shape: f32[32,2], index: 3, kind: input, shape index: {}]   ;;  %s418_s2 = inlined_call_operand.vmem [shape: f32[1,32], index: 2, kind: input, shape index: {}]   ;;  %s419_s4 = inlined_call_operand.vmem [shape: f32[1,2], index: 4, kind: input, shape index: {}]   ;;  %s420_s5 = inlined_call_operand.vmem [shape: f32[16,2], index: 5, kind: output, shape index: {}]  }
   0x1   :  { %v28_v0 = vld [vmem:[%s415_s1] sm:$0xff]  ;;  %v29_v1 = vld [vmem:[%s415_s1 + $0x8] sm:$0xff]  ;;  %v30_v2 = vld [vmem:[%s415_s1 + $0x10] sm:$0xff] }
   0x2   :  { %v297_v3 = vpack.c.bf16 %v29_v1, %v28_v0  ;;  %v31_v4 = vld [vmem:[%s415_s1 + $0x18] sm:$0xff]  ;;  %v32_v6 = vld [vmem:[%s415_s1 + $0x20] sm:$0xff]  ;;  %v33_v7 = vld [vmem:[%s415_s1 + $0x28] sm:$0xff] }
   0x3   :  { %v301_v5 = vpack.c.bf16 %v31_v4, %v30_v2  ;;  %v20_v8 = vld [vmem:[%s416_s0] sm:$0xff]  ;;  %v305_v10 = vpack.c.bf16 %v33_v7, %v32_v6  ;;  %v34_v12 = vld [vmem:[%s415_s1 + $0x30] sm:$0xff]  ;;  %v35_v13 = vld [vmem:[%s415_s1 + $0x38] sm:$0xff] }
   0x4   :  { %298 = vmatprep.subr.bf16.mxu0 %v297_v3  ;;  %vm22_vm0 = vcmp.gt.f32.partialorder %v20_v8, 0.0  ;;  %v24_v9 = vmul.f32 0.01, %v20_v8  ;;  %v309_v14 = vpack.c.bf16 %v35_v13, %v34_v12  ;;  %v21_v15 = vld [vmem:[%s416_s0 + $0x8] sm:$0xff]  ;;  %v131_v18 = vld [vmem:[%s417_s3] sm:$0xff]  ;;  %v133_v21 = vld [vmem:[%s417_s3 + $0x10] sm:$0xff] }
   0x5   :  { %300 = vmatpush3.bf16.msra.mxu0 %v297_v3  ;;  %v25_v16 = vmul.f32 0.01, %v21_v15  ;;  %vm23_vm2 = vcmp.gt.f32.partialorder %v21_v15, 0.0  ;;  %v132_v19 = vld [vmem:[%s417_s3 + $0x8] sm:$0xff]  ;;  %v134_v22 = vld [vmem:[%s417_s3 + $0x18] sm:$0xff] }
   0x6   :  { %302 = vmatprep.subr.bf16.mxu0 %v301_v5  ;;  %v26_v11 = vsel %vm22_vm0, %v20_v8, %v24_v9  ;;  %v313_v20 = vpack.c.bf16 %v132_v19, %v131_v18  ;;  %v317_v23 = vpack.c.bf16 %v134_v22, %v133_v21  ;;  %v243_v24 = vld [vmem:[%s418_s2] ss:$0 sm:$0xff] }
   0x7   :  { %283 = vmatprep.mubr.msk.f32.mxu0 %vm43_vm1, %v26_v11  ;;  %v27_v17 = vsel %vm23_vm2, %v21_v15, %v25_v16  ;;  %v246_v33 = vld [vmem:[%s419_s4] ss:$0 sm:$0xff] }
   0x8   :  { %314 = vmatprep.subr.bf16.mxu1 %v313_v20 }
   0x9   :  { %304 = vmatpush3.bf16.msra.mxu0 %v301_v5  ;;  %316 = vmatpush3.bf16.msra.mxu1 %v313_v20 }
   0xa   :  { %306 = vmatprep.subr.bf16.mxu0 %v305_v10  ;;  %318 = vmatprep.subr.bf16.mxu1 %v317_v23 }
   0xd   :  { %308 = vmatpush3.bf16.msra.mxu0 %v305_v10  ;;  %320 = vmatpush3.bf16.msra.mxu1 %v317_v23 }
   0xe   :  { %310 = vmatprep.subr.bf16.mxu0 %v309_v14 }
  0x11   :  { %312 = vmatpush3.bf16.msra.mxu0 %v309_v14 }
  0x14   :  { %284 = vmatmul.mubr.msk.f32.vlgmr.msra.gmra.mrb[0].mxu0 %vm43_vm1, %v27_v17 }
  0xe7   :  { %v285_v25 = vpop.f32.mrb[0].mxu0 }
  0xe8   :  { %v122_v26 = vadd.f32 %v285_v25, %v243_v24  ;;  %v116_v27 = vpop.f32.mrb[1].mxu0 }
  0xe9   :  { %v117_v28 = vadd.f32 %v243_v24, %v116_v27 }
  0xea   :  { %v128_v29 = vmul.f32 0.01, %v122_v26  ;;  %vm126_vm3 = vcmp.gt.f32.partialorder %v122_v26, 0.0 }
  0xeb   :  { %vm125_vm4 = vcmp.gt.f32.partialorder %v117_v28, 0.0  ;;  %v127_v30 = vmul.f32 0.01, %v117_v28 }
  0xec   :  { %v130_v32 = vsel %vm126_vm3, %v122_v26, %v128_v29 }
  0xed   :  { %v129_v31 = vsel %vm125_vm4, %v117_v28, %v127_v30 }
  0xee   :  { %294 = vmatprep.mubr.msk.f32.mxu1 %vm142_vm5, %v129_v31 }
  0xef   :  { %295 = vmatmul.mubr.msk.f32.vlgmr.msra.gmra.mrb[0].mxu1 %vm142_vm5, %v130_v32 }
 0x1c2   :  { %v296_v34 = vpop.f32.mrb[0].mxu1 }
 0x1c3   :  { %v221_v35 = vadd.f32 %v296_v34, %v246_v33  ;;  %v215_v36 = vpop.f32.mrb[1].mxu1 }
 0x1c4   :  { %v216_v37 = vadd.f32 %v246_v33, %v215_v36 }
 0x1c5   :  { %v250_v38 = vmul.f32 -1.442695, %v221_v35 }
 0x1c6   :  { %v249_v39 = vmul.f32 -1.442695, %v216_v37 }
 0x1c7   :  { %321 = vpow2.f32 %v250_v38 }
 0x1c8   :  { %323 = vpow2.f32 %v249_v39 }
 0x1d1   :  { %v322_v40 = vpop.eup %321 }
 0x1d2   :  { %v324_v41 = vpop.eup %323  ;;  %v231_v42 = vadd.f32 1.0, %v322_v40 }
 0x1d3   :  { %v230_v43 = vadd.f32 1.0, %v324_v41 }
 0x1d4   :  { %325 = vrcp.f32 %v231_v42 }
 0x1d5   :  { %327 = vrcp.f32 %v230_v43 }
 0x1de   :  { %v326_v44 = vpop.eup %325 }
 0x1df   :  { %v328_v45 = vpop.eup %327  ;;  %238 = vst.msk [vmem:[%s420_s5 + $0x8] sm:$0xff] %vm236_vm6, %v326_v44 }
 0x1e0   :  { %237 = vst.msk [vmem:[%s420_s5] sm:$0xff] %vm236_vm6, %v328_v45 }

// kernel: _model_apply.3
= control target key start
LH: loop header
LB: loop body
LE: loop exit
PB: predicated region body
PF: predicated region fallthrough
CT: control target
= control target key end

     0   :  { %s1780_s9 = smov 0   ;;  %s1782_s10 = smov 0   ;;  %s2044_s0 = inlined_call_operand.vmem [shape: f32[2,8,2,128], index: 0, kind: input, shape index: {}]   ;;  %s2045_s1 = inlined_call_operand.vmem [shape: f32[2,32,128], index: 1, kind: input, shape index: {}]   ;;  %s2046_s2 = inlined_call_operand.vmem [shape: f32[2,8,2,32], index: 2, kind: output, shape index: {}]  }
   0x1   :  { %s1784_s11 = smov 0  }
   0x2 LB: > { %s24_s12 = sadd.s32 1, %s1753_s10  ;;  %p1411_p0 = scmp.ge.s32.totalorder %s1757_s11, 1  ;;  %s1757_s11 = sphi %s1784_s11, %s12_s11   ;;  %s1753_s10 = sphi %s1782_s10, %s2050_s10   ;;  %s1749_s9 = sphi %s1780_s9, %s2049_s9  }
   0x3   : > { %p26_p1 = scmp.ge.s32.totalorder %s24_s12, 2  ;;  %p167_p2 = scmp.lt.s32.totalorder %s1757_s11, 3 }
   0x5   : > { %s2052_s12 = smov (%p26_p1, %s24_s12), 0  ;;  %p168_p3 = pnand %p1411_p0, %p167_p2 }
   0x6   : > { %p215_p4 = scmp.lt.s32.totalorder (!%p168_p3), %s1749_s9, 1  ;;  %vm255_vm0 = vcmask (!%p168_p3), 254976   ;;  %v1759_v0 = vmov (!%p168_p3), 0.0|0.0   ;;  %v1760_v1 = vmov (!%p168_p3), 0.0   ;;  %vm1761_vm1 = vmmov (!%p168_p3), 0   ;;  %s1418_s19 = smul.u32 (!%p168_p3), 14, %s1749_s9 }
   0x7   : > { %171 = sbr.rel (%p168_p3) target bundleno = 5829 (0x16c5), region = 28  ;;  %1593 = vmatprep.subr.bf16.mxu0 (!%p168_p3), %v1759_v0  ;;  %256 = vst.msk [vmem:[#allocation2] sm:$0x3] (!%p168_p3), %vm255_vm0, %v1760_v1  ;;  %257 = vst.msk [vmem:[#allocation3] sm:$0x3] (!%p168_p3), %vm255_vm0, %v1760_v1  ;;  %1513 = vmatprep.mubr.msk.f32.mxu0 (!%p168_p3), %vm1761_vm1, %v1760_v1  ;;  %vm272_vm2 = vcmask (!%p168_p3), 261120   ;;  %v262_v15 = vlaneseq (!%p168_p3) }
   0x8   : > { %1599 = vmatprep.subr.bf16.mxu1 (!%p168_p3), %v1759_v0  ;;  %1524 = vmatprep.mubr.msk.f32.mxu1 (!%p168_p3), %vm1761_vm1, %v1760_v1  ;;  %s1762_s24 = smov (!%p168_p3), 64   ;;  %s1763_s25 = smov (!%p168_p3), 32  }
   0x9   : > { %v263_v17 = vand.u32 (!%p168_p3), 127, %v262_v15  ;;  %s1764_s26 = smov (!%p168_p3), 96   ;;  %s1421_s3 = smul.u32 (!%p168_p3), 10, %s1749_s9 }
   0xa   : > { %s1427_s6 = smul.u32 (!%p168_p3), 6, %s1749_s9  ;;  %s755_s16 = ssub.s32 (!%p168_p3), 4, %s1749_s9 }
   0xb   : > { %vm264_vm3 = vcmp.ge.s32.totalorder (!%p168_p3), %v263_v17, 64  ;;  %vm265_vm4 = vcmp.lt.s32.totalorder (!%p168_p3), %v263_v17, 96  ;;  %s1442_s20 = smul.u32 (!%p168_p3), 4294967290, %s1749_s9 }
   0xc   : > { %vm1849_vm5 = vmand (!%p168_p3), %vm264_vm3, %vm265_vm4  ;;  %s1448_s27 = smul.u32 (!%p168_p3), 4294967286, %s1749_s9 }
   0xe   : > { %s1809_s13 = scalar_select %p215_p4, %s1749_s9, 1  ;;  %v271_v8 = vld [vmem:[#allocation2] sm:$0x3]  ;;  %v355_v22 = vld [vmem:[#allocation3] sm:$0x3] }
  0x10   : > { %s1463_s14 = sshll.u32 %s1809_s13, 5  ;;  %s1462_s18 = sshll.u32 %s1809_s13, 4 }
  0x11   : > { %s232_s17 = scalar_lea.vmem %s2045_s1, %s1463_s14  ;;  %s1844_s22 = scalar_lea.vmem %s2044_s0, %s1462_s18 }
  0x12   : > { %v258_v2 = vld [vmem:[%s232_s17] sm:$0xff]  ;;  %v259_v3 = vld [vmem:[%s232_s17 + $0x8] sm:$0xff]  ;;  %v260_v4 = vld [vmem:[%s232_s17 + $0x10] sm:$0xff]  ;;  %s269_s23 = scalar_lea.vmem %s1844_s22, %s1418_s19  ;;  %s1868_s29 = scalar_lea.vmem %s2046_s2, %s1462_s18 }
  0x13   : > { %v1818_v5 = vpack.c.bf16 %v259_v3, %v258_v2  ;;  %v261_v6 = vld [vmem:[%s232_s17 + $0x18] sm:$0xff]  ;;  %v270_v9 = vld [vmem:[%s269_s23] sm:$0x3]  ;;  %s388_s30 = scalar_lea.vmem %s1868_s29, %s1418_s19  ;;  %s1316_s4 = scalar_lea.vmem %s1844_s22, %s1421_s3 }
  0x14   : > { %v1821_v7 = vpack.c.bf16 %v261_v6, %v260_v4  ;;  %v1422_v36 = vld [vmem:[%s1316_s4 + $0x2] sm:$0x3]  ;;  %s1320_s5 = scalar_lea.vmem %s1868_s29, %s1421_s3  ;;  %s1324_s7 = scalar_lea.vmem %s1844_s22, %s1427_s6 }
  0x15   : > { %1595 = vmatpush3.bf16.msra.mxu0 %v1818_v5  ;;  %1601 = vmatpush3.bf16.msra.mxu1 %v1818_v5  ;;  %v1428_v59 = vld [vmem:[%s1324_s7 + $0x4] sm:$0x3]  ;;  %s1328_s8 = scalar_lea.vmem %s1868_s29, %s1427_s6  ;;  %s1433_s13 = sshll.u32 %s1749_s9, 1 }
  0x16   : > { %1596 = vmatprep.subr.bf16.mxu0 %v1759_v0  ;;  %1602 = vmatprep.subr.bf16.mxu1 %v1759_v0  ;;  %s1331_s14 = scalar_lea.vmem %s1844_s22, %s1433_s13  ;;  %s1334_s15 = scalar_lea.vmem %s1868_s29, %s1433_s13 }
  0x17   : > { %s1957_s17 = sshll.u32 %s755_s16, 1  ;;  %s1342_s21 = scalar_lea.vmem %s1844_s22, %s1442_s20 }
  0x18   : > { %s757_s18 = scalar_lea.vmem %s1844_s22, %s1957_s17  ;;  %s874_s19 = scalar_lea.vmem %s1868_s29, %s1957_s17 }
  0x19   : > { %1598 = vmatpush3.bf16.msra.mxu0 %v1821_v7  ;;  %1604 = vmatpush3.bf16.msra.mxu1 %v1821_v7  ;;  %s1346_s23 = scalar_lea.vmem %s1868_s29, %s1442_s20  ;;  %s1350_s28 = scalar_lea.vmem %s1844_s22, %s1448_s27 }
  0x1a   : > { %1605 = vmatprep.subr.bf16.mxu0 %v1759_v0  ;;  %1611 = vmatprep.subr.bf16.mxu1 %v1759_v0  ;;  %s1454_s3 = smul.u32 4294967282, %s1749_s9 }
  0x1c   : > { %1514 = vmatmul.mubr.msk.f32.vlgmr.msra.gmra.mrb[0].mxu0 %vm272_vm2, %v271_v8  ;;  %s1358_s4 = scalar_lea.vmem %s1844_s22, %s1454_s3  ;;  %s1362_s22 = scalar_lea.vmem %s1868_s29, %s1454_s3 }
  0x1d   : > { %1607 = vmatpush3.bf16.msra.mxu0 %v1818_v5  ;;  %1535 = vmatprep.mubr.msk.f32.mxu0 %vm1761_vm1, %v1760_v1 }
  0x1e   : > { %1608 = vmatprep.subr.bf16.mxu0 %v1759_v0 }
  0x21   : > { %1610 = vmatpush3.bf16.msra.mxu0 %v1821_v7 }
  0x22   : > { %1617 = vmatprep.subr.bf16.mxu0 %v1759_v0 }
  0xef   : > { %v342_v10 = vpop.f32.mrb[0].mxu0 }
  0xf0   : > { %v346_v11 = vadd.f32 %v342_v10, %v270_v9  ;;  %v1515_v12 = vpop.f32.mrb[1].mxu0 }
  0xf2   : > { %v1420_v13 = vmul.f32 -1.442695, %v346_v11 }
  0xf4   : > { %1671 = vpow2.f32 %v1420_v13 }
  0xf5   : > { %1673 = vtanh.f32 %v346_v11 }
  0xfe   : > { %v1672_v14 = vpop.eup %1671 }
  0xff   : > { %v351_v16 = vadd.f32 1.0, %v1672_v14  ;;  %v1674_v19 = vpop.eup %1673 }
 0x101   : > { %1675 = vrcp.f32 %v351_v16 }
 0x10b   : > { %v1676_v20 = vpop.eup %1675 }
 0x10c   : > { %v354_v21 = vsel %vm1849_vm5, %v1674_v19, %v1676_v20 }
 0x10d   : > { %362 = vrot.lane.b32.xlu0 %v354_v21, %s1762_s24 }
 0x111   : > { %357 = vrot.lane.b32.xlu0 %v355_v22, %s1763_s25 }
 0x17f   : > { %v363_v23 = vpop.permute.xlu0 %362 }
 0x180   : > { %v365_v24 = vmul.f32 %v363_v23, %v354_v21  ;;  %v1434_v23 = vld [vmem:[%s1331_s14 + $0x6] sm:$0x3] }
 0x182   : > { %367 = vrot.lane.b32.xlu1 %v365_v24, %s1763_s25 }
 0x183   : > { %v358_v25 = vpop.permute.xlu0 %357 }
 0x184   : > { %v360_v26 = vmul.f32 %v358_v25, %v354_v21 }
 0x1f4   : > { %v368_v27 = vpop.permute.xlu1 %367 }
 0x1f5   : > { %v370_v28 = vadd.f32 %v368_v27, %v360_v26 }
 0x1f7   : > { %1677 = vtanh.f32 %v370_v28 }
 0x201   : > { %v1678_v29 = vpop.eup %1677 }
 0x202   : > { %373 = vrot.lane.b32.xlu1 %v1678_v29, %s1762_s24 }
 0x206   : > { %378 = vrot.lane.b32.xlu1 %v370_v28, %s1764_s26 }
 0x274   : > { %v374_v30 = vpop.permute.xlu1 %373 }
 0x275   : > { %v376_v31 = vmul.f32 %v374_v30, %v354_v21 }
 0x277   : > { %384 = vrot.lane.b32.xlu0 %v376_v31, %s1763_s25 }
 0x278   : > { %v379_v32 = vpop.permute.xlu1 %378 }
 0x279   : > { %382 = vst.msk [vmem:[#allocation3] sm:$0x3] %vm255_vm0, %v379_v32 }
 0x280   : > { %v478_v33 = vld [vmem:[#allocation3] sm:$0x3] }
 0x281   : > { %480 = vrot.lane.b32.xlu1 %v478_v33, %s1763_s25 }
 0x2e9   : > { %v385_v34 = vpop.permute.xlu0 %384 }
 0x2ea   : > { %387 = vst.msk [vmem:[#allocation2] sm:$0x3] %vm255_vm0, %v385_v34  ;;  %389 = vst.msk [vmem:[%s388_s30] sm:$0x3] %vm255_vm0, %v385_v34  ;;  %s1354_s30 = scalar_lea.vmem %s1868_s29, %s1448_s27 }
 0x2f1   : > { %v395_v35 = vld [vmem:[#allocation2] sm:$0x3] }
 0x2f2   : > { %1525 = vmatmul.mubr.msk.f32.vlgmr.msra.gmra.mrb[0].mxu1 %vm272_vm2, %v395_v35 }
 0x2f3   : > { %1613 = vmatpush3.bf16.msra.mxu1 %v1818_v5  ;;  %1546 = vmatprep.mubr.msk.f32.mxu1 %vm1761_vm1, %v1760_v1  ;;  %v481_v48 = vpop.permute.xlu1 %480 }
 0x2f4   : > { %1614 = vmatprep.subr.bf16.mxu1 %v1759_v0 }
 0x2f7   : > { %1616 = vmatpush3.bf16.msra.mxu1 %v1821_v7 }
 0x2f8   : > { %1623 = vmatprep.subr.bf16.mxu1 %v1759_v0 }
 0x3c5   : > { %v465_v37 = vpop.f32.mrb[0].mxu1 }
 0x3c6   : > { %v469_v38 = vadd.f32 %v1422_v36, %v465_v37  ;;  %v1526_v39 = vpop.f32.mrb[1].mxu1 }
 0x3c8   : > { %v1424_v40 = vmul.f32 -1.442695, %v469_v38 }
 0x3ca   : > { %1679 = vpow2.f32 %v1424_v40 }
 0x3cb   : > { %1681 = vtanh.f32 %v469_v38 }
 0x3d4   : > { %v1680_v41 = vpop.eup %1679 }
 0x3d5   : > { %v474_v42 = vadd.f32 1.0, %v1680_v41  ;;  %v1682_v43 = vpop.eup %1681 }
 0x3d7   : > { %1683 = vrcp.f32 %v474_v42 }
 0x3e1   : > { %v1684_v44 = vpop.eup %1683 }
 0x3e2   : > { %v477_v45 = vsel %vm1849_vm5, %v1682_v43, %v1684_v44 }
 0x3e3   : > { %485 = vrot.lane.b32.xlu0 %v477_v45, %s1762_s24  ;;  %v483_v49 = vmul.f32 %v481_v48, %v477_v45 }
 0x455   : > { %v486_v46 = vpop.permute.xlu0 %485 }
 0x456   : > { %v488_v47 = vmul.f32 %v486_v46, %v477_v45  ;;  %v758_v46 = vld [vmem:[%s757_s18] sm:$0x3] }
 0x458   : > { %490 = vrot.lane.b32.xlu0 %v488_v47, %s1763_s25 }
 0x4ca   : > { %v491_v50 = vpop.permute.xlu0 %490 }
 0x4cb   : > { %v493_v51 = vadd.f32 %v491_v50, %v483_v49 }
 0x4cd   : > { %1685 = vtanh.f32 %v493_v51 }
 0x4d7   : > { %v1686_v52 = vpop.eup %1685 }
 0x4d8   : > { %496 = vrot.lane.b32.xlu1 %v1686_v52, %s1762_s24 }
 0x4dc   : > { %501 = vrot.lane.b32.xlu1 %v493_v51, %s1764_s26 }
 0x54a   : > { %v497_v53 = vpop.permute.xlu1 %496 }
 0x54b   : > { %v499_v54 = vmul.f32 %v497_v53, %v477_v45 }
 0x54d   : > { %506 = vrot.lane.b32.xlu0 %v499_v54, %s1763_s25 }
 0x54e   : > { %v502_v55 = vpop.permute.xlu1 %501 }
 0x54f   : > { %504 = vst.msk [vmem:[#allocation3] sm:$0x3] %vm255_vm0, %v502_v55 }
 0x556   : > { %v600_v56 = vld [vmem:[#allocation3] sm:$0x3] }
 0x557   : > { %602 = vrot.lane.b32.xlu1 %v600_v56, %s1763_s25 }
 0x5bf   : > { %v507_v57 = vpop.permute.xlu0 %506 }
 0x5c0   : > { %509 = vst.msk [vmem:[#allocation2] sm:$0x3] %vm255_vm0, %v507_v57  ;;  %1426 = vst.msk [vmem:[%s1320_s5 + $0x2] sm:$0x3] %vm255_vm0, %v507_v57 }
 0x5c7   : > { %v517_v58 = vld [vmem:[#allocation2] sm:$0x3] }
 0x5c8   : > { %1536 = vmatmul.mubr.msk.f32.vlgmr.msra.gmra.mrb[2].mxu0 %vm272_vm2, %v517_v58 }
 0x5c9   : > { %1619 = vmatpush3.bf16.msra.mxu0 %v1818_v5  ;;  %1557 = vmatprep.mubr.msk.f32.mxu0 %vm1761_vm1, %v1760_v1  ;;  %v603_v11 = vpop.permute.xlu1 %602 }
 0x5ca   : > { %1620 = vmatprep.subr.bf16.mxu0 %v1759_v0 }
 0x5cd   : > { %1622 = vmatpush3.bf16.msra.mxu0 %v1821_v7 }
 0x5ce   : > { %1629 = vmatprep.subr.bf16.mxu0 %v1759_v0 }
 0x69b   : > { %v587_v60 = vpop.f32.mrb[2].mxu0 }
 0x69c   : > { %v591_v61 = vadd.f32 %v1428_v59, %v587_v60  ;;  %v1537_v62 = vpop.f32.mrb[3].mxu0 }
 0x69e   : > { %v1430_v63 = vmul.f32 -1.442695, %v591_v61 }
 0x6a0   : > { %1687 = vpow2.f32 %v1430_v63 }
 0x6a1   : > { %1689 = vtanh.f32 %v591_v61 }
 0x6aa   : > { %v1688_v2 = vpop.eup %1687 }
 0x6ab   : > { %v596_v3 = vadd.f32 1.0, %v1688_v2  ;;  %v1690_v4 = vpop.eup %1689 }
 0x6ad   : > { %1691 = vrcp.f32 %v596_v3 }
 0x6b7   : > { %v1692_v6 = vpop.eup %1691 }
 0x6b8   : > { %v599_v8 = vsel %vm1849_vm5, %v1690_v4, %v1692_v6 }
 0x6b9   : > { %607 = vrot.lane.b32.xlu0 %v599_v8, %s1762_s24  ;;  %v605_v12 = vmul.f32 %v603_v11, %v599_v8 }
 0x72b   : > { %v608_v9 = vpop.permute.xlu0 %607 }
 0x72c   : > { %v610_v10 = vmul.f32 %v608_v9, %v599_v8  ;;  %v1443_v9 = vld [vmem:[%s1342_s21 + $0xa] sm:$0x3] }
 0x72e   : > { %612 = vrot.lane.b32.xlu0 %v610_v10, %s1763_s25 }
 0x7a0   : > { %v613_v13 = vpop.permute.xlu0 %612 }
 0x7a1   : > { %v615_v14 = vadd.f32 %v613_v13, %v605_v12 }
 0x7a3   : > { %1693 = vtanh.f32 %v615_v14 }
 0x7ad   : > { %v1694_v15 = vpop.eup %1693 }
 0x7ae   : > { %618 = vrot.lane.b32.xlu1 %v1694_v15, %s1762_s24 }
 0x7b2   : > { %623 = vrot.lane.b32.xlu1 %v615_v14, %s1764_s26 }
 0x820   : > { %v619_v16 = vpop.permute.xlu1 %618 }
 0x821   : > { %v621_v17 = vmul.f32 %v619_v16, %v599_v8 }
 0x823   : > { %628 = vrot.lane.b32.xlu0 %v621_v17, %s1763_s25 }
 0x824   : > { %v624_v19 = vpop.permute.xlu1 %623 }
 0x825   : > { %626 = vst.msk [vmem:[#allocation3] sm:$0x3] %vm255_vm0, %v624_v19 }
 0x82c   : > { %v721_v20 = vld [vmem:[#allocation3] sm:$0x3] }
 0x82d   : > { %723 = vrot.lane.b32.xlu1 %v721_v20, %s1763_s25 }
 0x895   : > { %v629_v21 = vpop.permute.xlu0 %628 }
 0x896   : > { %631 = vst.msk [vmem:[#allocation2] sm:$0x3] %vm255_vm0, %v629_v21  ;;  %1432 = vst.msk [vmem:[%s1328_s8 + $0x4] sm:$0x3] %vm255_vm0, %v629_v21 }
 0x89d   : > { %v638_v22 = vld [vmem:[#allocation2] sm:$0x3] }
 0x89e   : > { %1547 = vmatmul.mubr.msk.f32.vlgmr.msra.gmra.mrb[2].mxu1 %vm272_vm2, %v638_v22 }
 0x89f   : > { %1625 = vmatpush3.bf16.msra.mxu1 %v1818_v5  ;;  %1568 = vmatprep.mubr.msk.f32.mxu1 %vm1761_vm1, %v1760_v1  ;;  %v724_v35 = vpop.permute.xlu1 %723 }
 0x8a0   : > { %1626 = vmatprep.subr.bf16.mxu1 %v1759_v0 }
 0x8a3   : > { %1628 = vmatpush3.bf16.msra.mxu1 %v1821_v7 }
 0x8a4   : > { %1635 = vmatprep.subr.bf16.mxu1 %v1759_v0 }
 0x971   : > { %v708_v24 = vpop.f32.mrb[2].mxu1 }
 0x972   : > { %v712_v25 = vadd.f32 %v1434_v23, %v708_v24  ;;  %v1548_v26 = vpop.f32.mrb[3].mxu1 }
 0x974   : > { %v1436_v27 = vmul.f32 -1.442695, %v712_v25 }
 0x976   : > { %1695 = vpow2.f32 %v1436_v27 }
 0x977   : > { %1697 = vtanh.f32 %v712_v25 }
 0x980   : > { %v1696_v28 = vpop.eup %1695 }
 0x981   : > { %v717_v29 = vadd.f32 1.0, %v1696_v28  ;;  %v1698_v30 = vpop.eup %1697 }
 0x983   : > { %1699 = vrcp.f32 %v717_v29  ;;  %v1449_v29 = vld [vmem:[%s1350_s28 + $0xc] sm:$0x3] }
 0x98d   : > { %v1700_v31 = vpop.eup %1699 }
 0x98e   : > { %v720_v32 = vsel %vm1849_vm5, %v1698_v30, %v1700_v31 }
 0x98f   : > { %728 = vrot.lane.b32.xlu0 %v720_v32, %s1762_s24  ;;  %v726_v36 = vmul.f32 %v724_v35, %v720_v32 }
 0xa01   : > { %v729_v33 = vpop.permute.xlu0 %728 }
 0xa02   : > { %v731_v34 = vmul.f32 %v729_v33, %v720_v32 }
 0xa04   : > { %733 = vrot.lane.b32.xlu0 %v731_v34, %s1763_s25 }
 0xa76   : > { %v734_v37 = vpop.permute.xlu0 %733 }
 0xa77   : > { %v736_v38 = vadd.f32 %v734_v37, %v726_v36 }
 0xa79   : > { %1701 = vtanh.f32 %v736_v38 }
 0xa83   : > { %v1702_v39 = vpop.eup %1701 }
 0xa84   : > { %739 = vrot.lane.b32.xlu1 %v1702_v39, %s1762_s24 }
 0xa88   : > { %744 = vrot.lane.b32.xlu1 %v736_v38, %s1764_s26 }
 0xaf6   : > { %v740_v40 = vpop.permute.xlu1 %739 }
 0xaf7   : > { %v742_v41 = vmul.f32 %v740_v40, %v720_v32 }
 0xaf9   : > { %749 = vrot.lane.b32.xlu0 %v742_v41, %s1763_s25 }
 0xafa   : > { %v745_v42 = vpop.permute.xlu1 %744 }
 0xafb   : > { %747 = vst.msk [vmem:[#allocation3] sm:$0x3] %vm255_vm0, %v745_v42 }
 0xb02   : > { %v842_v43 = vld [vmem:[#allocation3] sm:$0x3] }
 0xb03   : > { %844 = vrot.lane.b32.xlu1 %v842_v43, %s1763_s25 }
 0xb6b   : > { %v750_v44 = vpop.permute.xlu0 %749 }
 0xb6c   : > { %752 = vst.msk [vmem:[#allocation2] sm:$0x3] %vm255_vm0, %v750_v44  ;;  %1438 = vst.msk [vmem:[%s1334_s15 + $0x6] sm:$0x3] %vm255_vm0, %v750_v44 }
 0xb73   : > { %v759_v45 = vld [vmem:[#allocation2] sm:$0x3] }
 0xb74   : > { %1558 = vmatmul.mubr.msk.f32.vlgmr.msra.gmra.mrb[4].mxu0 %vm272_vm2, %v759_v45 }
 0xb75   : > { %1631 = vmatpush3.bf16.msra.mxu0 %v1818_v5  ;;  %1579 = vmatprep.mubr.msk.f32.mxu0 %vm1761_vm1, %v1760_v1  ;;  %v845_v58 = vpop.permute.xlu1 %844 }
 0xb76   : > { %1632 = vmatprep.subr.bf16.mxu0 %v1759_v0 }
 0xb79   : > { %1634 = vmatpush3.bf16.msra.mxu0 %v1821_v7 }
 0xc47   : > { %v829_v47 = vpop.f32.mrb[4].mxu0 }
 0xc48   : > { %v833_v48 = vadd.f32 %v829_v47, %v758_v46  ;;  %v1559_v49 = vpop.f32.mrb[5].mxu0 }
 0xc4a   : > { %v1441_v50 = vmul.f32 -1.442695, %v833_v48 }
 0xc4c   : > { %1703 = vpow2.f32 %v1441_v50 }
 0xc4d   : > { %1705 = vtanh.f32 %v833_v48 }
 0xc56   : > { %v1704_v51 = vpop.eup %1703 }
 0xc57   : > { %v838_v52 = vadd.f32 1.0, %v1704_v51  ;;  %v1706_v53 = vpop.eup %1705 }
 0xc59   : > { %1707 = vrcp.f32 %v838_v52  ;;  %v1455_v52 = vld [vmem:[%s1358_s4 + $0xe] sm:$0x3] }
 0xc63   : > { %v1708_v54 = vpop.eup %1707 }
 0xc64   : > { %v841_v55 = vsel %vm1849_vm5, %v1706_v53, %v1708_v54 }
 0xc65   : > { %849 = vrot.lane.b32.xlu0 %v841_v55, %s1762_s24  ;;  %v847_v59 = vmul.f32 %v845_v58, %v841_v55 }
 0xcd7   : > { %v850_v56 = vpop.permute.xlu0 %849 }
 0xcd8   : > { %v852_v57 = vmul.f32 %v850_v56, %v841_v55 }
 0xcda   : > { %854 = vrot.lane.b32.xlu0 %v852_v57, %s1763_s25 }
 0xd4c   : > { %v855_v60 = vpop.permute.xlu0 %854 }
 0xd4d   : > { %v857_v61 = vadd.f32 %v855_v60, %v847_v59 }
 0xd4f   : > { %1709 = vtanh.f32 %v857_v61 }
 0xd59   : > { %v1710_v62 = vpop.eup %1709 }
 0xd5a   : > { %860 = vrot.lane.b32.xlu1 %v1710_v62, %s1762_s24 }
 0xd5e   : > { %865 = vrot.lane.b32.xlu1 %v857_v61, %s1764_s26 }
 0xdcc   : > { %v861_v63 = vpop.permute.xlu1 %860 }
 0xdcd   : > { %v863_v2 = vmul.f32 %v861_v63, %v841_v55 }
 0xdcf   : > { %870 = vrot.lane.b32.xlu0 %v863_v2, %s1763_s25 }
 0xdd0   : > { %v866_v3 = vpop.permute.xlu1 %865 }
 0xdd1   : > { %868 = vst.msk [vmem:[#allocation3] sm:$0x3] %vm255_vm0, %v866_v3 }
 0xdd8   : > { %v964_v4 = vld [vmem:[#allocation3] sm:$0x3] }
 0xdd9   : > { %966 = vrot.lane.b32.xlu1 %v964_v4, %s1763_s25 }
 0xe41   : > { %v871_v6 = vpop.permute.xlu0 %870 }
 0xe42   : > { %873 = vst.msk [vmem:[#allocation2] sm:$0x3] %vm255_vm0, %v871_v6  ;;  %875 = vst.msk [vmem:[%s874_s19] sm:$0x3] %vm255_vm0, %v871_v6 }
 0xe49   : > { %v881_v8 = vld [vmem:[#allocation2] sm:$0x3] }
 0xe4a   : > { %1569 = vmatmul.mubr.msk.f32.vlgmr.msra.gmra.mrb[4].mxu1 %vm272_vm2, %v881_v8 }
 0xe4b   : > { %1637 = vmatpush3.bf16.msra.mxu1 %v1818_v5  ;;  %1590 = vmatprep.mubr.msk.f32.mxu1 %vm1761_vm1, %v1760_v1  ;;  %v967_v17 = vpop.permute.xlu1 %966 }
 0xe4c   : > { %1638 = vmatprep.subr.bf16.mxu1 %v1759_v0 }
 0xe4f   : > { %1640 = vmatpush3.bf16.msra.mxu1 %v1821_v7 }
 0xf1d   : > { %v951_v10 = vpop.f32.mrb[4].mxu1 }
 0xf1e   : > { %v955_v11 = vadd.f32 %v1443_v9, %v951_v10  ;;  %v1570_v12 = vpop.f32.mrb[5].mxu1 }
 0xf20   : > { %v1445_v13 = vmul.f32 -1.442695, %v955_v11 }
 0xf22   : > { %1711 = vpow2.f32 %v1445_v13 }
 0xf23   : > { %1713 = vtanh.f32 %v955_v11 }
 0xf2c   : > { %v1712_v14 = vpop.eup %1711 }
 0xf2d   : > { %v960_v15 = vadd.f32 1.0, %v1712_v14  ;;  %v1714_v5 = vpop.eup %1713 }
 0xf2f   : > { %1715 = vrcp.f32 %v960_v15 }
 0xf39   : > { %v1716_v16 = vpop.eup %1715 }
 0xf3a   : > { %v963_v0 = vsel %vm1849_vm5, %v1714_v5, %v1716_v16 }
 0xf3b   : > { %971 = vrot.lane.b32.xlu0 %v963_v0, %s1762_s24  ;;  %v969_v19 = vmul.f32 %v967_v17, %v963_v0 }
 0xfad   : > { %v972_v1 = vpop.permute.xlu0 %971 }
 0xfae   : > { %v974_v7 = vmul.f32 %v972_v1, %v963_v0 }
 0xfb0   : > { %976 = vrot.lane.b32.xlu0 %v974_v7, %s1763_s25 }
0x1022   : > { %v977_v20 = vpop.permute.xlu0 %976 }
0x1023   : > { %v979_v21 = vadd.f32 %v977_v20, %v969_v19 }
0x1025   : > { %1717 = vtanh.f32 %v979_v21 }
0x102f   : > { %v1718_v22 = vpop.eup %1717 }
0x1030   : > { %982 = vrot.lane.b32.xlu1 %v1718_v22, %s1762_s24 }
0x1034   : > { %987 = vrot.lane.b32.xlu1 %v979_v21, %s1764_s26 }
0x10a2   : > { %v983_v23 = vpop.permute.xlu1 %982 }
0x10a3   : > { %v985_v24 = vmul.f32 %v983_v23, %v963_v0 }
0x10a5   : > { %992 = vrot.lane.b32.xlu0 %v985_v24, %s1763_s25 }
0x10a6   : > { %v988_v25 = vpop.permute.xlu1 %987 }
0x10a7   : > { %990 = vst.msk [vmem:[#allocation3] sm:$0x3] %vm255_vm0, %v988_v25 }
0x10ae   : > { %v1086_v26 = vld [vmem:[#allocation3] sm:$0x3] }
0x10af   : > { %1088 = vrot.lane.b32.xlu1 %v1086_v26, %s1763_s25 }
0x1117   : > { %v993_v27 = vpop.permute.xlu0 %992 }
0x1118   : > { %995 = vst.msk [vmem:[#allocation2] sm:$0x3] %vm255_vm0, %v993_v27  ;;  %1447 = vst.msk [vmem:[%s1346_s23 + $0xa] sm:$0x3] %vm255_vm0, %v993_v27 }
0x111f   : > { %v1003_v28 = vld [vmem:[#allocation2] sm:$0x3] }
0x1120   : > { %1580 = vmatmul.mubr.msk.f32.vlgmr.msra.gmra.mrb[6].mxu0 %vm272_vm2, %v1003_v28 }
0x1121   : > { %v1089_v41 = vpop.permute.xlu1 %1088 }
0x11f3   : > { %v1073_v30 = vpop.f32.mrb[6].mxu0 }
0x11f4   : > { %v1077_v31 = vadd.f32 %v1449_v29, %v1073_v30  ;;  %v1581_v32 = vpop.f32.mrb[7].mxu0 }
0x11f6   : > { %v1451_v33 = vmul.f32 -1.442695, %v1077_v31 }
0x11f8   : > { %1719 = vpow2.f32 %v1451_v33 }
0x11f9   : > { %1721 = vtanh.f32 %v1077_v31 }
0x1202   : > { %v1720_v34 = vpop.eup %1719 }
0x1203   : > { %v1082_v35 = vadd.f32 1.0, %v1720_v34  ;;  %v1722_v36 = vpop.eup %1721 }
0x1205   : > { %1723 = vrcp.f32 %v1082_v35 }
0x120f   : > { %v1724_v37 = vpop.eup %1723 }
0x1210   : > { %v1085_v38 = vsel %vm1849_vm5, %v1722_v36, %v1724_v37 }
0x1211   : > { %1093 = vrot.lane.b32.xlu0 %v1085_v38, %s1762_s24  ;;  %v1091_v42 = vmul.f32 %v1089_v41, %v1085_v38 }
0x1283   : > { %v1094_v39 = vpop.permute.xlu0 %1093 }
0x1284   : > { %v1096_v40 = vmul.f32 %v1094_v39, %v1085_v38 }
0x1286   : > { %1098 = vrot.lane.b32.xlu0 %v1096_v40, %s1763_s25 }
0x12f8   : > { %v1099_v43 = vpop.permute.xlu0 %1098 }
0x12f9   : > { %v1101_v44 = vadd.f32 %v1099_v43, %v1091_v42 }
0x12fb   : > { %1725 = vtanh.f32 %v1101_v44 }
0x1305   : > { %v1726_v45 = vpop.eup %1725 }
0x1306   : > { %1104 = vrot.lane.b32.xlu1 %v1726_v45, %s1762_s24 }
0x130a   : > { %1109 = vrot.lane.b32.xlu1 %v1101_v44, %s1764_s26 }
0x1378   : > { %v1105_v46 = vpop.permute.xlu1 %1104 }
0x1379   : > { %v1107_v47 = vmul.f32 %v1105_v46, %v1085_v38 }
0x137b   : > { %1114 = vrot.lane.b32.xlu0 %v1107_v47, %s1763_s25 }
0x137c   : > { %v1110_v48 = vpop.permute.xlu1 %1109 }
0x137d   : > { %1112 = vst.msk [vmem:[#allocation3] sm:$0x3] %vm255_vm0, %v1110_v48 }
0x1384   : > { %v1208_v49 = vld [vmem:[#allocation3] sm:$0x3] }
0x1385   : > { %1210 = vrot.lane.b32.xlu1 %v1208_v49, %s1763_s25 }
0x13ed   : > { %v1115_v50 = vpop.permute.xlu0 %1114 }
0x13ee   : > { %1117 = vst.msk [vmem:[#allocation2] sm:$0x3] %vm255_vm0, %v1115_v50  ;;  %1453 = vst.msk [vmem:[%s1354_s30 + $0xc] sm:$0x3] %vm255_vm0, %v1115_v50 }
0x13f5   : > { %v1125_v51 = vld [vmem:[#allocation2] sm:$0x3] }
0x13f6   : > { %1591 = vmatmul.mubr.msk.f32.vlgmr.msra.gmra.mrb[6].mxu1 %vm272_vm2, %v1125_v51 }
0x13f7   : > { %v1211_v2 = vpop.permute.xlu1 %1210 }
0x14c9   : > { %v1195_v53 = vpop.f32.mrb[6].mxu1 }
0x14ca   : > { %v1199_v54 = vadd.f32 %v1455_v52, %v1195_v53  ;;  %v1592_v55 = vpop.f32.mrb[7].mxu1 }
0x14cc   : > { %v1457_v56 = vmul.f32 -1.442695, %v1199_v54 }
0x14ce   : > { %1727 = vpow2.f32 %v1457_v56 }
0x14cf   : > { %1729 = vtanh.f32 %v1199_v54 }
0x14d8   : > { %v1728_v57 = vpop.eup %1727 }
0x14d9   : > { %v1204_v58 = vadd.f32 1.0, %v1728_v57  ;;  %v1730_v59 = vpop.eup %1729 }
0x14db   : > { %1731 = vrcp.f32 %v1204_v58 }
0x14e5   : > { %v1732_v60 = vpop.eup %1731 }
0x14e6   : > { %v1207_v61 = vsel %vm1849_vm5, %v1730_v59, %v1732_v60 }
0x14e7   : > { %1215 = vrot.lane.b32.xlu0 %v1207_v61, %s1762_s24  ;;  %v1213_v3 = vmul.f32 %v1211_v2, %v1207_v61 }
0x1559   : > { %v1216_v62 = vpop.permute.xlu0 %1215 }
0x155a   : > { %v1218_v63 = vmul.f32 %v1216_v62, %v1207_v61 }
0x155c   : > { %1220 = vrot.lane.b32.xlu0 %v1218_v63, %s1763_s25 }
0x15ce   : > { %v1221_v4 = vpop.permute.xlu0 %1220 }
0x15cf   : > { %v1223_v6 = vadd.f32 %v1221_v4, %v1213_v3 }
0x15d1   : > { %1733 = vtanh.f32 %v1223_v6  ;;  %1231 = vrot.lane.b32.xlu0 %v1223_v6, %s1764_s26 }
0x15db   : > { %v1734_v8 = vpop.eup %1733 }
0x15dc   : > { %1226 = vrot.lane.b32.xlu1 %v1734_v8, %s1762_s24 }
0x1643   : > { %v1232_v18 = vpop.permute.xlu0 %1231 }
0x1644   : > { %1234 = vst.msk [vmem:[#allocation3] sm:$0x3] %vm255_vm0, %v1232_v18 }
0x164e   : > { %v1227_v9 = vpop.permute.xlu1 %1226 }
0x164f   : > { %v1229_v10 = vmul.f32 %v1227_v9, %v1207_v61 }
0x1651   : > { %1236 = vrot.lane.b32.xlu1 %v1229_v10, %s1763_s25 }
0x16c3   : > { %v1237_v11 = vpop.permute.xlu1 %1236 }
0x16c4   : > { %1239 = vst.msk [vmem:[#allocation2] sm:$0x3] %vm255_vm0, %v1237_v11  ;;  %1459 = vst.msk [vmem:[%s1362_s22 + $0xe] sm:$0x3] %vm255_vm0, %v1237_v11 }
0x16c5 PF: > { %s12_s11 = sadd.s32 1, %s1757_s11   ;;  %s2049_s9 = smov %s1753_s10 }
0x16c6   : > { %p9_p5 = scmp.ge.s32.totalorder %s12_s11, 4   ;;  %s2050_s10 = smov %s2052_s12 }
0x16c8   :  { %11 = sbr.rel (!%p9_p5) target bundleno = 2 (0x2), region = 81 }

</bundles_post_ra>
